<compile_context>
chip_gen: v6e
topology: v6e:2x2x1
jax: 0.10.0
libtpu: 0.0.40
codegen_flags: <defaults>
</compile_context>

<pallas_src>
import math

import jax
import jax.numpy as jnp
from jax import lax
from jax.experimental import pallas as pl
from jax.experimental.pallas import tpu as pltpu


def _round_up(a, b):
    return -(-a // b) * b


def uhg_conv_kernel(x_t_ref, edges_ref, w_ref, b_ref, out_ref, acc_ref, cnt_ref):
    k = pl.program_id(0)                      # edge tile index (reduction axis)

    @pl.when(k == 0)
    def _():
        acc_ref[...] = jnp.zeros_like(acc_ref)
        cnt_ref[...] = jnp.zeros_like(cnt_ref)

    x_t = x_t_ref[...]                        # (C_in, N_pad) f32, whole array
    edges = edges_ref[...]                    # (2, TE) int32; padded edges = -1
    row = edges[0:1, :]                       # (1, TE)
    col = edges[1:2, :]                       # (1, TE)

    c_in, n_pad = x_t.shape
    te = edges.shape[1]

    # One-hot selection matrices. Padded edges carry index -1 which matches no
    # node id -> dropped for free.
    node_ids = lax.broadcasted_iota(jnp.int32, (n_pad, te), 0)
    sel_col = (node_ids == col).astype(jnp.float32)      # (N_pad, TE)
    sel_row = (node_ids == row).astype(jnp.float32)      # (N_pad, TE)

    hi = lax.Precision.HIGHEST
    # Gathers as MXU matmuls; edges stay on the lane axis.
    x_j = jnp.dot(x_t, sel_col, precision=hi,
                  preferred_element_type=jnp.float32)    # (C_in, TE)
    x_i = jnp.dot(x_t, sel_row, precision=hi,
                  preferred_element_type=jnp.float32)    # (C_in, TE)

    # TODO(synk): UHGMetric.distance is not defined in the provided snippet; we
    # use the hyperboloid distance d = acosh(max(-<x,y>_Minkowski, 1)).
    # Minkowski inner product: last channel carries a -1 sign (in-register flip,
    # no sign-flipped copy of x needed).
    chan = lax.broadcasted_iota(jnp.int32, (c_in, te), 0)
    sign = jnp.where(chan == c_in - 1, -1.0, 1.0)
    inner = jnp.sum(x_i * x_j * sign, axis=0, keepdims=True)            # (1, TE)

    z = jnp.maximum(-inner, 1.0)
    # exp(-acosh(z)) == 1 / (z + sqrt(z^2 - 1))  -> no log, no exp.
    # (pl.reciprocal(..., approx=True) is a further EUP option when tolerance allows.)
    scale = 1.0 / (z + jnp.sqrt(jnp.maximum(z * z - 1.0, 0.0)))         # (1, TE)
    messages = x_j * scale                                              # (C_in, TE)

    # Scatter-add over destination nodes (minor-minor contraction, Q.K^T style):
    #   acc[c, n] += sum_e messages[c, e] * sel_row[n, e]
    dn = (((1,), (1,)), ((), ()))
    acc_ref[...] += lax.dot_general(messages, sel_row, dn, precision=hi,
                                    preferred_element_type=jnp.float32)  # (C_in, N_pad)
    # Degree counts via a separate 1-row dot (keeps the scatter LHS at C_in rows).
    ones_row = jnp.ones((1, te), jnp.float32)
    cnt_ref[...] += lax.dot_general(ones_row, sel_row, dn, precision=hi,
                                    preferred_element_type=jnp.float32)  # (1, N_pad)

    @pl.when(k == pl.num_programs(0) - 1)
    def _():
        counts = jnp.maximum(cnt_ref[...], 1.0)                          # (1, N_pad)
        agg = acc_ref[...] / counts                                      # (C_in, N_pad)
        # F.linear in transposed layout: (C_out, C_in) @ (C_in, N_pad) + bias
        out_t = jnp.dot(w_ref[...], agg, precision=hi,
                        preferred_element_type=jnp.float32) + b_ref[...]  # (C_out, N_pad)
        # project_to_uhg: x / (||x||_2 + 1e-8)
        norm = jnp.sqrt(jnp.sum(out_t * out_t, axis=0, keepdims=True))    # (1, N_pad)
        out_ref[...] = out_t / (norm + 1e-8)


def uhg_conv(x, edge_index, weight, bias=None, *, edge_tile=512,
             vmem_limit_bytes=None):
    """x: (N, C_in) f32, edge_index: (2, E) int, weight: (C_out, C_in), bias: (C_out,)."""
    n, c_in = x.shape
    c_out = weight.shape[0]
    e = edge_index.shape[1]

    # Edge tiling (reduction grid axis); TE is a lane-dense multiple of 128.
    edge_tile = _round_up(max(edge_tile, 128), 128)
    te = min(edge_tile, _round_up(e, 128))
    e_pad = _round_up(e, te)

    row = edge_index[0].astype(jnp.int32)
    col = edge_index[1].astype(jnp.int32)
    if e_pad > e:
        pad = jnp.full((e_pad - e,), -1, jnp.int32)   # -1 never matches a node id
        row = jnp.concatenate([row, pad])
        col = jnp.concatenate([col, pad])
    edges = jnp.stack([row, col])                      # (2, E_pad) packed row/col

    # Whole padded node range is a single resident tile (lane-dense stores, no
    # redundant per-node-tile message recompute).
    n_pad = _round_up(n, 128)
    x_t = jnp.transpose(x).astype(jnp.float32)         # (C_in, N)
    if n_pad > n:
        x_t = jnp.pad(x_t, ((0, 0), (0, n_pad - n)))

    w = weight.astype(jnp.float32)                     # (C_out, C_in)
    if bias is None:
        b2d = jnp.zeros((c_out, 1), jnp.float32)
    else:
        b2d = bias.reshape(c_out, 1).astype(jnp.float32)

    cp_kwargs = dict(dimension_semantics=("arbitrary",))
    if vmem_limit_bytes is not None:
        cp_kwargs["vmem_limit_bytes"] = vmem_limit_bytes

    grid = (e_pad // te,)
    out_t = pl.pallas_call(
        uhg_conv_kernel,
        out_shape=jax.ShapeDtypeStruct((c_out, n_pad), jnp.float32),
        grid_spec=pltpu.PrefetchScalarGridSpec(
            num_scalar_prefetch=0,
            grid=grid,
            in_specs=[
                # Constant operands: whole-array VMEM residents (single-buffered).
                pl.BlockSpec(memory_space=pltpu.MemorySpace.VMEM),   # x_t
                pl.BlockSpec((2, te), lambda k: (0, k)),             # packed row/col
                pl.BlockSpec(memory_space=pltpu.MemorySpace.VMEM),   # weight
                pl.BlockSpec(memory_space=pltpu.MemorySpace.VMEM),   # bias
            ],
            out_specs=pl.BlockSpec((c_out, n_pad), lambda k: (0, 0)),
            scratch_shapes=[pltpu.VMEM((c_in, n_pad), jnp.float32),  # message acc
                            pltpu.VMEM((1, n_pad), jnp.float32)],    # degree acc
        ),
        compiler_params=pltpu.CompilerParams(**cp_kwargs),
    )(x_t, edges, w, b2d)

    # Back to the module's (N, C_out) layout.
    return jnp.transpose(out_t[:, :n])


def uhg_conv_reference(x, edge_index, weight, bias):
    """Pure-JAX reference mirroring the PyTorch forward."""
    row, col = edge_index[0], edge_index[1]
    x_i, x_j = x[row], x[col]
    spatial = jnp.sum(x_i[:, :-1] * x_j[:, :-1], axis=-1)
    inner = spatial - x_i[:, -1] * x_j[:, -1]
    z = jnp.maximum(-inner, 1.0)
    dist = jnp.arccosh(z)
    messages = x_j * jnp.exp(-dist)[:, None]
    n = x.shape[0]
    agg = jnp.zeros((n, x.shape[1]), jnp.float32).at[row].add(messages)
    counts = jnp.zeros((n,), jnp.float32).at[row].add(1.0)
    counts = jnp.maximum(counts, 1.0)
    agg = agg / counts[:, None]
    out = agg @ weight.T + bias
    norm = jnp.linalg.norm(out, axis=-1, keepdims=True)
    return out / (norm + 1e-8)


if __name__ == "__main__":
    N, E = 32, 320
    C_IN, C_OUT = 8, 8

    key = jax.random.PRNGKey(0)
    kx, krow, kcol, kw, kb = jax.random.split(key, 5)

    x = jax.random.normal(kx, (N, C_IN), dtype=jnp.float32)
    edge_index = jnp.stack([
        jax.random.randint(krow, (E,), 0, N, dtype=jnp.int32),
        jax.random.randint(kcol, (E,), 0, N, dtype=jnp.int32),
    ])

    # kaiming_uniform_(a=sqrt(5)) on (C_OUT, C_IN) -> uniform(-1/sqrt(fan_in), +...)
    fan_in = C_IN
    bound = 1.0 / math.sqrt(fan_in)
    weight = jax.random.uniform(kw, (C_OUT, C_IN), jnp.float32, -bound, bound)
    bias = jax.random.uniform(kb, (C_OUT,), jnp.float32, -bound, bound)

    # edge_tile=128 exercises the tiled edge-reduction path: grid = (3,) with the
    # tail edge tile padded by -1 sentinel edges.
    out = uhg_conv(x, edge_index, weight, bias, edge_tile=128)
    out = jax.block_until_ready(out)

    ref = uhg_conv_reference(x, edge_index, weight, bias)
    assert out.shape == (N, C_OUT)
    assert jnp.allclose(out, ref, atol=1e-5, rtol=1e-4), "mismatch vs JAX reference"

    print("KERNEL_OK")
</pallas_src>

<mosaic_0001>
module attributes {stable_mosaic.version = 11 : i64} {
  func.func @uhg_conv_kernel(%arg0: i32, %arg1: memref<8x128xf32, #tpu.memory_space<vmem>>, %arg2: memref<2x128xi32, #tpu.memory_space<vmem>>, %arg3: memref<8x8xf32, #tpu.memory_space<vmem>>, %arg4: memref<8x1xf32, #tpu.memory_space<vmem>>, %arg5: memref<8x128xf32, #tpu.memory_space<vmem>>, %arg6: memref<8x128xf32, #tpu.memory_space<vmem>>, %arg7: memref<1x128xf32, #tpu.memory_space<vmem>>) attributes {dimension_semantics = [#tpu.dimension_semantics<arbitrary>], iteration_bounds = array<i64: 3>, scalar_prefetch = 0 : i64, scratch_operands = 2 : i64, tpu.core_type = #tpu.core_type<tc>, window_params = [{pipeline_mode = #tpu.pipeline_mode<synchronous>, transform_indices = @transform_0, window_bounds = array<i64: 8, 128>}, {transform_indices = @transform_1, window_bounds = array<i64: 2, 128>}, {pipeline_mode = #tpu.pipeline_mode<synchronous>, transform_indices = @transform_2, window_bounds = array<i64: 8, 8>}, {pipeline_mode = #tpu.pipeline_mode<synchronous>, transform_indices = @transform_3, window_bounds = array<i64: 8, 1>}, {pipeline_mode = #tpu.pipeline_mode<synchronous>, transform_indices = @transform_4, window_bounds = array<i64: 8, 128>}]} {
    %c0_i32 = arith.constant 0 : i32
    %0 = arith.cmpi eq, %arg0, %c0_i32 : i32
    %1 = arith.extui %0 : i1 to i32
    %c0_i32_0 = arith.constant 0 : i32
    %2 = arith.cmpi ne, %1, %c0_i32_0 : i32
    scf.if %2 {
      %cst_25 = arith.constant 0.000000e+00 : f32
      %55 = vector.broadcast %cst_25 : f32 to vector<8x128xf32>
      %c0_26 = arith.constant 0 : index
      %c0_27 = arith.constant 0 : index
      %56 = vector.load %arg6[%c0_26, %c0_27] : memref<8x128xf32, #tpu.memory_space<vmem>>, vector<8x128xf32>
      tpu.vector_store %arg6[%c0_26, %c0_27], %55 {strides = array<i32>} : memref<8x128xf32, #tpu.memory_space<vmem>>, vector<8x128xf32>,
      %cst_28 = arith.constant 0.000000e+00 : f32
      %57 = vector.broadcast %cst_28 : f32 to vector<1x128xf32>
      %c0_29 = arith.constant 0 : index
      %c0_30 = arith.constant 0 : index
      %58 = vector.load %arg7[%c0_29, %c0_30] : memref<1x128xf32, #tpu.memory_space<vmem>>, vector<1x128xf32>
      tpu.vector_store %arg7[%c0_29, %c0_30], %57 {strides = array<i32>} : memref<1x128xf32, #tpu.memory_space<vmem>>, vector<1x128xf32>,
    } else {
    }
    %c0 = arith.constant 0 : index
    %c0_1 = arith.constant 0 : index
    %3 = vector.load %arg1[%c0, %c0_1] : memref<8x128xf32, #tpu.memory_space<vmem>>, vector<8x128xf32>
    %c0_2 = arith.constant 0 : index
    %c0_3 = arith.constant 0 : index
    %4 = vector.load %arg2[%c0_2, %c0_3] : memref<2x128xi32, #tpu.memory_space<vmem>>, vector<2x128xi32>
    %5 = vector.extract_strided_slice %4 {offsets = [0, 0], sizes = [1, 128], strides = [1, 1]} : vector<2x128xi32> to vector<1x128xi32>
    %6 = vector.extract_strided_slice %4 {offsets = [1, 0], sizes = [1, 128], strides = [1, 1]} : vector<2x128xi32> to vector<1x128xi32>
    %7 = tpu.iota {dimensions = array<i32: 0>} : vector<128x128xi32>
    %8 = vector.broadcast %6 : vector<1x128xi32> to vector<128x128xi32>
    %9 = arith.cmpi eq, %7, %8 : vector<128x128xi32>
    %10 = arith.extui %9 : vector<128x128xi1> to vector<128x128xi32>
    %11 = arith.sitofp %10 : vector<128x128xi32> to vector<128x128xf32>
    %12 = vector.broadcast %5 : vector<1x128xi32> to vector<128x128xi32>
    %13 = arith.cmpi eq, %7, %12 : vector<128x128xi32>
    %14 = arith.extui %13 : vector<128x128xi1> to vector<128x128xi32>
    %15 = arith.sitofp %14 : vector<128x128xi32> to vector<128x128xf32>
    %cst = arith.constant dense<0.000000e+00> : vector<8x128xf32>
    %16 = tpu.matmul %3, %11, %cst {dimension_numbers = #tpu.dot_dimension_numbers<[1], [0], [0], [1], [0, 0, 1, 1], [], []>, precision = #tpu.contract_precision<fp32>} : vector<8x128xf32>, vector<128x128xf32>, vector<8x128xf32> -> vector<8x128xf32>
    %cst_4 = arith.constant dense<0.000000e+00> : vector<8x128xf32>
    %17 = tpu.matmul %3, %15, %cst_4 {dimension_numbers = #tpu.dot_dimension_numbers<[1], [0], [0], [1], [0, 0, 1, 1], [], []>, precision = #tpu.contract_precision<fp32>} : vector<8x128xf32>, vector<128x128xf32>, vector<8x128xf32> -> vector<8x128xf32>
    %18 = tpu.iota {dimensions = array<i32: 0>} : vector<8x128xi32>
    %c7_i32 = arith.constant 7 : i32
    %19 = vector.broadcast %c7_i32 : i32 to vector<8x128xi32>
    %20 = arith.cmpi eq, %18, %19 : vector<8x128xi32>
    %cst_5 = arith.constant -1.000000e+00 : f32
    %cst_6 = arith.constant 1.000000e+00 : f32
    %21 = vector.broadcast %cst_5 : f32 to vector<8x128xf32>
    %22 = vector.broadcast %cst_6 : f32 to vector<8x128xf32>
    %23 = arith.select %20, %21, %22 : vector<8x128xi1>, vector<8x128xf32>
    %24 = arith.mulf %17, %16 : vector<8x128xf32>
    %25 = arith.mulf %24, %23 : vector<8x128xf32>
    %cst_7 = arith.constant dense<0.000000e+00> : vector<128xf32>
    %26 = vector.multi_reduction <add>, %25, %cst_7 [0] : vector<8x128xf32> to vector<128xf32>
    %27 = vector.shape_cast %26 : vector<128xf32> to vector<1x128xf32>
    %cst_8 = arith.constant 0.000000e+00 : f32
    %28 = vector.broadcast %cst_8 : f32 to vector<1x128xf32>
    %29 = arith.subf %28, %27 : vector<1x128xf32>
    %cst_9 = arith.constant 1.000000e+00 : f32
    %30 = vector.broadcast %cst_9 : f32 to vector<1x128xf32>
    %31 = arith.maximumf %29, %30 : vector<1x128xf32>
    %32 = arith.mulf %31, %31 : vector<1x128xf32>
    %cst_10 = arith.constant 1.000000e+00 : f32
    %33 = vector.broadcast %cst_10 : f32 to vector<1x128xf32>
    %34 = arith.subf %32, %33 : vector<1x128xf32>
    %cst_11 = arith.constant 0.000000e+00 : f32
    %35 = vector.broadcast %cst_11 : f32 to vector<1x128xf32>
    %36 = arith.maximumf %34, %35 : vector<1x128xf32>
    %37 = math.sqrt %36 : vector<1x128xf32>
    %38 = arith.addf %31, %37 : vector<1x128xf32>
    %cst_12 = arith.constant 1.000000e+00 : f32
    %39 = vector.broadcast %cst_12 : f32 to vector<1x128xf32>
    %40 = arith.divf %39, %38 : vector<1x128xf32>
    %41 = vector.broadcast %40 : vector<1x128xf32> to vector<8x128xf32>
    %42 = arith.mulf %16, %41 : vector<8x128xf32>
    %c0_13 = arith.constant 0 : index
    %c0_14 = arith.constant 0 : index
    %43 = vector.load %arg6[%c0_13, %c0_14] : memref<8x128xf32, #tpu.memory_space<vmem>>, vector<8x128xf32>
    %cst_15 = arith.constant dense<0.000000e+00> : vector<8x128xf32>
    %44 = tpu.matmul %42, %15, %cst_15 {dimension_numbers = #tpu.dot_dimension_numbers<[1], [1], [0], [0], [0, 0, 1, 0], [], []>, precision = #tpu.contract_precision<fp32>} : vector<8x128xf32>, vector<128x128xf32>, vector<8x128xf32> -> vector<8x128xf32>
    %45 = arith.addf %43, %44 : vector<8x128xf32>
    %c0_16 = arith.constant 0 : index
    %c0_17 = arith.constant 0 : index
    %46 = vector.load %arg6[%c0_16, %c0_17] : memref<8x128xf32, #tpu.memory_space<vmem>>, vector<8x128xf32>
    tpu.vector_store %arg6[%c0_16, %c0_17], %45 {strides = array<i32>} : memref<8x128xf32, #tpu.memory_space<vmem>>, vector<8x128xf32>,
    %cst_18 = arith.constant 1.000000e+00 : f32
    %47 = vector.broadcast %cst_18 : f32 to vector<1x128xf32>
    %c0_19 = arith.constant 0 : index
    %c0_20 = arith.constant 0 : index
    %48 = vector.load %arg7[%c0_19, %c0_20] : memref<1x128xf32, #tpu.memory_space<vmem>>, vector<1x128xf32>
    %cst_21 = arith.constant dense<0.000000e+00> : vector<1x128xf32>
    %49 = tpu.matmul %47, %15, %cst_21 {dimension_numbers = #tpu.dot_dimension_numbers<[1], [1], [0], [0], [0, 0, 1, 0], [], []>, precision = #tpu.contract_precision<fp32>} : vector<1x128xf32>, vector<128x128xf32>, vector<1x128xf32> -> vector<1x128xf32>
    %50 = arith.addf %48, %49 : vector<1x128xf32>
    %c0_22 = arith.constant 0 : index
    %c0_23 = arith.constant 0 : index
    %51 = vector.load %arg7[%c0_22, %c0_23] : memref<1x128xf32, #tpu.memory_space<vmem>>, vector<1x128xf32>
    tpu.vector_store %arg7[%c0_22, %c0_23], %50 {strides = array<i32>} : memref<1x128xf32, #tpu.memory_space<vmem>>, vector<1x128xf32>,
    %c2_i32 = arith.constant 2 : i32
    %52 = arith.cmpi eq, %arg0, %c2_i32 : i32
    %53 = arith.extui %52 : i1 to i32
    %c0_i32_24 = arith.constant 0 : i32
    %54 = arith.cmpi ne, %53, %c0_i32_24 : i32
    scf.if %54 {
      %c0_25 = arith.constant 0 : index
      %c0_26 = arith.constant 0 : index
      %55 = vector.load %arg7[%c0_25, %c0_26] : memref<1x128xf32, #tpu.memory_space<vmem>>, vector<1x128xf32>
      %cst_27 = arith.constant 1.000000e+00 : f32
      %56 = vector.broadcast %cst_27 : f32 to vector<1x128xf32>
      %57 = arith.maximumf %55, %56 : vector<1x128xf32>
      %c0_28 = arith.constant 0 : index
      %c0_29 = arith.constant 0 : index
      %58 = vector.load %arg6[%c0_28, %c0_29] : memref<8x128xf32, #tpu.memory_space<vmem>>, vector<8x128xf32>
      %59 = vector.broadcast %57 : vector<1x128xf32> to vector<8x128xf32>
      %60 = arith.divf %58, %59 : vector<8x128xf32>
      %c0_30 = arith.constant 0 : index
      %c0_31 = arith.constant 0 : index
      %61 = vector.load %arg3[%c0_30, %c0_31] : memref<8x8xf32, #tpu.memory_space<vmem>>, vector<8x8xf32>
      %cst_32 = arith.constant dense<0.000000e+00> : vector<8x128xf32>
      %62 = tpu.matmul %61, %60, %cst_32 {dimension_numbers = #tpu.dot_dimension_numbers<[1], [0], [0], [1], [0, 0, 1, 1], [], []>, precision = #tpu.contract_precision<fp32>} : vector<8x8xf32>, vector<8x128xf32>, vector<8x128xf32> -> vector<8x128xf32>
      %c0_33 = arith.constant 0 : index
      %c0_34 = arith.constant 0 : index
      %63 = vector.load %arg4[%c0_33, %c0_34] : memref<8x1xf32, #tpu.memory_space<vmem>>, vector<8x1xf32>
      %64 = vector.broadcast %63 : vector<8x1xf32> to vector<8x128xf32>
      %65 = arith.addf %62, %64 : vector<8x128xf32>
      %66 = arith.mulf %65, %65 : vector<8x128xf32>
      %cst_35 = arith.constant dense<0.000000e+00> : vector<128xf32>
      %67 = vector.multi_reduction <add>, %66, %cst_35 [0] : vector<8x128xf32> to vector<128xf32>
      %68 = vector.shape_cast %67 : vector<128xf32> to vector<1x128xf32>
      %69 = math.sqrt %68 : vector<1x128xf32>
      %cst_36 = arith.constant 9.99999993E-9 : f32
      %70 = vector.broadcast %cst_36 : f32 to vector<1x128xf32>
      %71 = arith.addf %69, %70 : vector<1x128xf32>
      %72 = vector.broadcast %71 : vector<1x128xf32> to vector<8x128xf32>
      %73 = arith.divf %65, %72 : vector<8x128xf32>
      %c0_37 = arith.constant 0 : index
      %c0_38 = arith.constant 0 : index
      %74 = vector.load %arg5[%c0_37, %c0_38] : memref<8x128xf32, #tpu.memory_space<vmem>>, vector<8x128xf32>
      tpu.vector_store %arg5[%c0_37, %c0_38], %73 {strides = array<i32>} : memref<8x128xf32, #tpu.memory_space<vmem>>, vector<8x128xf32>,
    } else {
    }
    return
  }
  func.func @transform_0(%arg0: i32) -> (i32, i32) {
    %c0_i32 = arith.constant 0 : i32
    %c0_i32_0 = arith.constant 0 : i32
    %c0_i32_1 = arith.constant 0 : i32
    return %c0_i32, %c0_i32_0 : i32, i32
  }
  func.func @transform_1(%arg0: i32) -> (i32, i32) {
    %c0_i32 = arith.constant 0 : i32
    %c0_i32_0 = arith.constant 0 : i32
    return %c0_i32, %arg0 : i32, i32
  }
  func.func @transform_2(%arg0: i32) -> (i32, i32) {
    %c0_i32 = arith.constant 0 : i32
    %c0_i32_0 = arith.constant 0 : i32
    %c0_i32_1 = arith.constant 0 : i32
    return %c0_i32, %c0_i32_0 : i32, i32
  }
  func.func @transform_3(%arg0: i32) -> (i32, i32) {
    %c0_i32 = arith.constant 0 : i32
    %c0_i32_0 = arith.constant 0 : i32
    %c0_i32_1 = arith.constant 0 : i32
    return %c0_i32, %c0_i32_0 : i32, i32
  }
  func.func @transform_4(%arg0: i32) -> (i32, i32) {
    %c0_i32 = arith.constant 0 : i32
    %c0_i32_0 = arith.constant 0 : i32
    %c0_i32_1 = arith.constant 0 : i32
    return %c0_i32, %c0_i32_0 : i32, i32
  }
}

</mosaic_0001>

<bundles_post_ra>
// kernel: tpu_custom_call.1
= control target key start
LH: loop header
LB: loop body
LE: loop exit
PB: predicated region body
PF: predicated region fallthrough
CT: control target
= control target key end

     0   :  { %9 = vsyncpa [#allocation5], 0  ;;  %s7225_s0 = inlined_call_operand.vmem [shape: f32[8,128], index: 0, kind: input, shape index: {}]   ;;  %s7226_s1 = inlined_call_operand.hbm [shape: s32[2,384], index: 1, kind: input, shape index: {}]   ;;  %s7227_s2 = inlined_call_operand.hbm [shape: f32[8,8], index: 2, kind: input, shape index: {}]   ;;  %s7228_s3 = inlined_call_operand.vmem [shape: f32[8,1], index: 3, kind: input, shape index: {}]   ;;  %s7229_s4 = inlined_call_operand.hbm [shape: f32[8,128], index: 4, kind: output, shape index: {}]  }
   0x1   :  { %11 = vsyncpa [#allocation5 + $0x1], 0 }
   0x2   :  { %12 = vsyncpa [#allocation8], 0 }
   0x3   :  { %13 = vsyncpa [#allocation6], 0  ;;  %s5245_s15 = smov 0   ;;  %s5247_s16 = smov 0  }
   0x4   :  { %s5249_s17 = smov 0   ;;  %s5251_s18 = smov 0  }
   0x5 LB: > { %s5264_s19 = sadd.s32 4294967295, %s5208_s18   ;;  %p60_p0 = scmp.ne.s32.totalorder %s5200_s16, %s5196_s15  ;;  %s5208_s18 = sphi %s5251_s18, %s7509_s18   ;;  %s5204_s17 = sphi %s5249_s17, %s7508_s17   ;;  %s5200_s16 = sphi %s5247_s16, %s7507_s16   ;;  %s5196_s15 = sphi %s5245_s15, %s7506_s15  }
   0x6   : > { %p7230_p1 = scmp.eq.s32.totalorder %s5264_s19, 0  ;;  %p3484_p2 = scmp.ge.s32.totalorder %s5208_s18, 1 }
   0x7   : > { %p134_p3 = scmp.lt.s32.totalorder %s5208_s18, 4  ;;  %s5210_s22 = smov [#allocation7]  }
   0x8   : > { %p5273_p5 = por %p7230_p1, %p60_p0  ;;  %s150_s23 = sshll.u32 %s5210_s22, 4  ;;  %s151_s23 = int_to_ptr.vmem [resolvable:$true] %s150_s23 }
   0x9   : > { %p5277_p6 = pnand %p3484_p2, %p134_p3  ;;  %s5284_s24 = sadd.s32 1, %s5208_s18  }
   0xa   : > { %s7334_s20 = scalar_select %p5273_p5, 1, 0 }
   0xb   : > { %s7335_s21 = scalar_select %p5277_p6, 1, 0 }
   0xc   : > { %p5023_p7 = pneg %p5277_p6  ;;  %s44_s26 = ssub.s32 %s5208_s18, %s5284_s24 }
   0xd   : > { %p5294_p9 = scmp.eq.s32.totalorder %s44_s26, 0  ;;  %s47_s28 = sadd.s32 1, %s5204_s17 }
   0xe   : > { %p5288_p8 = pnand %p5023_p7, %p7230_p1  ;;  %p54_p10 = scmp.ne.s32.totalorder %s5204_s17, %s5200_s16 }
   0xf   : > { %s5099_s29 = scalar_lea.vmem %s151_s23, 128  ;;  %p5107_p2 = scmp.lt.s32.totalorder %s151_s23, %s151_s23 }
  0x10   : > { %p5090_p11 = pneg %p5288_p8  ;;  %p5100_p12 = scmp.ne.s32.totalorder %s151_s23, %s5099_s29 }
  0x11   : > { %p5108_p3 = scmp.lt.s32.totalorder %s5099_s29, %s5099_s29 }
  0x12   : > { %p5102_p13 = pnand %p5100_p12, %p5090_p11 }
  0x13   : > { %p5109_p7 = por %p5108_p3, %p5107_p2 }
  0x14   : > { %p5103_p0 = pneg %p5102_p13 }
  0x16   : > { %p5110_p4 = pnand %p5109_p7, %p5103_p0 }
  0x18   : > { %5113 = shalt.err (!%p5110_p4)
}
  0x19   : > { %5026 = dma.hbm_to_vmem [thread:$0]  (!%p5288_p8), %s7227_s2, 128, %s151_s23, [#allocation8]  }
  0x1a   : > { %s5311_s6 = scalar_select %p5294_p9, %s5204_s17, %s47_s28  }
  0x1b   : > { %p55_p11 = scmp.eq.s32.totalorder %s5208_s18, 0  ;;  %p5032_p12 = scmp.lt.s32.totalorder %s5208_s18, 3 }
  0x1c   : > { %s164_s7 = sand.u32 1, %s5204_s17   ;;  %s3488_s8 = sshll.u32 %s5208_s18, 5 }
  0x1d   : > { %p56_p4 = por %p55_p11, %p54_p10  ;;  %s3487_s9 = sshll.u32 %s164_s7, 1 }
  0x1e   : > { %s5323_s12 = scalar_lea.hbm %s7226_s1, %s3488_s8  ;;  %s168_s14 = scalar_lea.vmem [#allocation4], %s3487_s9 }
  0x1f   : > { %p5325_p13 = pnand %p5032_p12, %p56_p4  ;;  %s175_s15 = sshll.u32 %s168_s14, 4  ;;  %s176_s15 = int_to_ptr.vmem [resolvable:$true] %s175_s15 }
  0x20   : > { %s165_s18 = scalar_lea.sflag [#allocation5], %s164_s7  ;;  %s5114_s22 = scalar_lea.hbm %s5323_s12, 32 }
  0x21   : > { %p5115_p8 = scmp.ne.s32.totalorder %s5323_s12, %s5114_s22  ;;  %p5116_p9 = pneg %p5325_p13 }
  0x22   : > { %s5119_s26 = scalar_lea.hbm %s7226_s1, 96  ;;  %p5120_p2 = scmp.lt.s32.totalorder %s5323_s12, %s7226_s1 }
  0x23   : > { %p5117_p10 = pnand %p5116_p9, %p5115_p8  ;;  %p5121_p3 = scmp.lt.s32.totalorder %s5119_s26, %s5114_s22 }
  0x25   : > { %p5118_p0 = pneg %p5117_p10  ;;  %p5122_p7 = por %p5121_p3, %p5120_p2 }
  0x27   : > { %p5123_p11 = pnand %p5122_p7, %p5118_p0 }
  0x29   : > { %5126 = shalt.err (!%p5123_p11)
}
  0x2a   : > { %s5127_s29 = scalar_lea.vmem %s176_s15, 32  ;;  %s5211_s30 = smov [#allocation4]  }
  0x2b   : > { %p5128_p12 = scmp.ne.s32.totalorder %s176_s15, %s5127_s29  ;;  %s5132_s5 = sshll.u32 %s5211_s30, 4  ;;  %s5133_s5 = int_to_ptr.vmem [resolvable:$false] %s5132_s5 }
  0x2c   : > { %s5134_s7 = scalar_lea.vmem %s5133_s5, 64  ;;  %p5135_p8 = scmp.lt.s32.totalorder %s176_s15, %s5133_s5 }
  0x2d   : > { %p5130_p4 = pnand %p5128_p12, %p5116_p9  ;;  %p5136_p10 = scmp.lt.s32.totalorder %s5134_s7, %s5127_s29 }
  0x2f   : > { %p5131_p1 = pneg %p5130_p4  ;;  %p5137_p5 = por %p5136_p10, %p5135_p8 }
  0x31   : > { %p5138_p6 = pnand %p5137_p5, %p5131_p1 }
  0x33   : > { %5141 = shalt.err (!%p5138_p6)
}
  0x34   : > { %5030 = dma.hbm_to_vmem [thread:$0]  (!%p5325_p13), %s5323_s12, 32, %s176_s15, %s165_s18  }
  0x35   : > { %p7339_p0 = scmp.ne.s32.totalorder %s7335_s21, 0 }
  0x37   : > { %184 = sbr.rel (%p7339_p0) target bundleno = 1392 (0x570), region = 36 }
  0x3c   : > { %s186_s8 = sand.u32 1, %s5200_s16   ;;  %p7340_p9 = scmp.ne.s32.totalorder %s7334_s20, 0 }
  0x3d   : > { %s3490_s9 = sshll.u32 %s186_s8, 1  ;;  %s187_s10 = scalar_lea.sflag [#allocation5], %s186_s8 }
  0x3e   : > { %s190_s11 = scalar_lea.vmem [#allocation4], %s3490_s9 }
  0x3f   : > { %5183 = dma.done.wait (%p7340_p9), %s187_s10, 32  }
  0x40   : > { %5185 = vsyncadd (%p7340_p9), %s187_s10, 4294967264  ;;  %p7341_p1 = scmp.eq.s32.totalorder %s5264_s19, 0 }
  0x42   : > { %5187 = dma.done.wait (%p7341_p1), [#allocation8], 128   ;;  %p7342_p5 = pmov %p7341_p1 }
  0x43   : > { %p7343_p6 = scmp.ne.s32.totalorder %s5264_s19, 0 }
  0x44   : > { %5189 = vsyncadd (%p7342_p5), [#allocation8], 4294967168 }
  0x45   : > { %217 = sbr.rel (%p7343_p6) target bundleno = 76 (0x4c), region = 48 }
  0x4a   : > { %v5212_v0 = vmov 0.0  }
  0x4b   : > { %218 = vst [vmem:[#allocation2] sm:$0xff] %v5212_v0  ;;  %219 = vst [vmem:[#allocation3] sm:$0x1] %v5212_v0 }
  0x4c PF: > { %v222_v1 = vlaneseq  ;;  %v7314_v2 = vmov 0.0   ;;  %vm7233_vm0 = vmmov 0   ;;  %v221_v4 = vld [vmem:[%s190_s11] sm:$0x3]  ;;  %v7347_v21 = vmov 0  ;;  %v220_v53 = vld [vmem:[%s7225_s0] sm:$0xff] }
  0x4d   : > { %4143 = vmatprep.subr.mxu0 %v7314_v2  ;;  %4178 = vmatprep.subr.mxu1 %v7314_v2  ;;  %v7298_v22 = vmov 1.0   ;;  %v7349_v24 = vmov 0  ;;  %v7351_v28 = vmov 0  ;;  %v7355_v34 = vmov 0  ;;  %p3718_p13 = scmp.ne.s32.totalorder %s5264_s19, 2 }
  0x4e   : > { %v5358_v3 = vshrl.u32 %v222_v1, 7  ;;  %4175 = vmatprep.mubr.msk.f32.mxu0 %vm7233_vm0, %v7314_v2  ;;  %4210 = vmatprep.mubr.msk.f32.mxu1 %vm7233_vm0, %v7314_v2  ;;  %v7357_v40 = vmov 0  ;;  %v7361_v55 = vmov 0  ;;  %v7363_v62 = vmov 0 }
  0x4f   : > { %v5594_v63 = vand.u32 4294901760, %v220_v53 }
  0x50   : > { %7344 = vst [vmem:[#allocation13_spill] sm:$0xff] %v5358_v3  ;;  %v5365_v5 = vadd.s32 120, %v5358_v3  ;;  %v241_v6 = vsub.s32 1, %v5358_v3  ;;  %v7245_v7 = vsub.s32 0, %v5358_v3  ;;  %v5370_v8 = vadd.s32 112, %v5358_v3 }
  0x51   : > { %v5373_v9 = vadd.s32 104, %v5358_v3  ;;  %v5376_v10 = vadd.s32 96, %v5358_v3  ;;  %v5379_v11 = vadd.s32 88, %v5358_v3  ;;  %v5388_v14 = vadd.s32 80, %v5358_v3 }
  0x52   : > { %v5381_v12 = vrot.slane %v221_v4, %v241_v6  ;;  %v5385_v13 = vrot.slane %v221_v4, %v7245_v7  ;;  %v5391_v15 = vadd.s32 72, %v5358_v3  ;;  %v5394_v16 = vadd.s32 64, %v5358_v3 }
  0x53   : > { %v5397_v17 = vadd.s32 56, %v5358_v3  ;;  %v5400_v18 = vadd.s32 48, %v5358_v3  ;;  %v5403_v19 = vadd.s32 40, %v5358_v3  ;;  %v5471_v31 = vadd.s32 32, %v5358_v3 }
  0x54   : > { %vm7241_vm1 = vcmp.eq.s32.totalorder %v5365_v5, %v5381_v12  ;;  %vm5409_vm2 = vcmp.eq.s32.totalorder %v5365_v5, %v5385_v13  ;;  %vm7239_vm3 = vcmp.eq.s32.totalorder %v5370_v8, %v5381_v12  ;;  %vm5417_vm4 = vcmp.eq.s32.totalorder %v5370_v8, %v5385_v13 }
  0x55   : > { %v7348_v21 = vsel %vm5417_vm4, 4294967295, %v7347_v21  ;;  %4144 = vmatpush3.msk.msra.mxu0 %vm7241_vm1, %v7298_v22  ;;  %v3507_v23 = vsel %vm7239_vm3, 1.0, %v7314_v2  ;;  %vm7237_vm5 = vcmp.eq.s32.totalorder %v5373_v9, %v5381_v12  ;;  %vm5433_vm6 = vcmp.eq.s32.totalorder %v5373_v9, %v5385_v13 }
  0x56   : > { %v7350_v24 = vsel %vm5433_vm6, 4294967295, %v7349_v24  ;;  %vm7236_vm7 = vcmp.eq.s32.totalorder %v5376_v10, %v5381_v12  ;;  %4145 = vmatprep.subr.mxu0 %v7314_v2  ;;  %v5440_v25 = vsub.f32 %v3507_v23, %v3507_v23  ;;  %v3506_v26 = vsel %vm7237_vm5, 1.0, %v7314_v2 }
  0x57   : > { %v3505_v27 = vsel %vm7236_vm7, 1.0, %v7314_v2  ;;  %vm5452_vm8 = vcmp.eq.s32.totalorder %v5376_v10, %v5385_v13  ;;  %4146 = vmatpush3.msk.msra.mxu0 %vm7239_vm3, %v7298_v22  ;;  %v5460_v29 = vsub.f32 %v3506_v26, %v3506_v26  ;;  %vm7235_vm9 = vcmp.eq.s32.totalorder %v5379_v11, %v5381_v12 }
  0x58   : > { %v7352_v28 = vsel %vm5452_vm8, 4294967295, %v7351_v28  ;;  %vm5466_vm10 = vcmp.eq.s32.totalorder %v5379_v11, %v5385_v13  ;;  %4147 = vmatprep.subr.mxu0 %v7314_v2  ;;  %v3504_v32 = vsel %vm7235_vm9, 1.0, %v7314_v2  ;;  %v3508_v33 = vsel %vm7241_vm1, 1.0, %v7314_v2 }
  0x59   : > { %vm7238_vm11 = vcmp.eq.s32.totalorder %v5388_v14, %v5381_v12  ;;  %vm5486_vm12 = vcmp.eq.s32.totalorder %v5388_v14, %v5385_v13  ;;  %4148 = vmatpush3.msk.msra.mxu0 %vm7237_vm5, %v7298_v22  ;;  %v5494_v35 = vsub.f32 %v3505_v27, %v3505_v27  ;;  %v5496_v36 = vsub.f32 %v3508_v33, %v3508_v33 }
  0x5a   : > { %v7356_v34 = vsel %vm5486_vm12, 4294967295, %v7355_v34  ;;  %v3503_v37 = vsel %vm7238_vm11, 1.0, %v7314_v2  ;;  %v7260_v38 = vand.u32 4294901760, %v5440_v25  ;;  %4149 = vmatprep.subr.mxu0 %v7314_v2  ;;  %v5504_v39 = vsub.f32 %v3504_v32, %v3504_v32 }
  0x5b   : > { %vm7240_vm13 = vcmp.eq.s32.totalorder %v5391_v15, %v5381_v12  ;;  %vm5510_vm14 = vcmp.eq.s32.totalorder %v5391_v15, %v5385_v13  ;;  %v7259_v41 = vand.u32 4294901760, %v5460_v29  ;;  %4150 = vmatpush3.msk.msra.mxu0 %vm7236_vm7, %v7298_v22  ;;  %v7261_v42 = vand.u32 4294901760, %v5496_v36 }
  0x5c   : > { %v7358_v40 = vsel %vm5510_vm14, 4294967295, %v7357_v40  ;;  %v445_v43 = vsub.f32 %v5440_v25, %v7260_v38  ;;  %v3502_v44 = vsel %vm7240_vm13, 1.0, %v7314_v2  ;;  %vm7242_vm15 = vcmp.eq.s32.totalorder %v5394_v16, %v5381_v12  ;;  %4151 = vmatprep.subr.mxu0 %v7314_v2 }
  0x5d   : > { %v5530_v45 = vsub.f32 %v3503_v37, %v3503_v37  ;;  %v452_v46 = vsub.f32 %v5460_v29, %v7259_v41  ;;  %v3501_v47 = vsel %vm7242_vm15, 1.0, %v7314_v2  ;;  %vm5541_vm0 = vcmp.eq.s32.totalorder %v5394_v16, %v5385_v13  ;;  %4152 = vmatpush3.msk.msra.mxu0 %vm7235_vm9, %v7298_v22 }
  0x5e   : > { %v438_v49 = vsub.f32 %v5496_v36, %v7261_v42  ;;  %v446_v50 = vand.u32 4294901760, %v445_v43  ;;  %v5552_v51 = vsub.f32 %v3502_v44, %v3502_v44  ;;  %v7258_v52 = vand.u32 4294901760, %v5494_v35  ;;  %4153 = vmatprep.subr.mxu0 %v7314_v2 }
  0x5f   : > { %v5559_v54 = vsub.f32 %v3501_v47, %v3501_v47  ;;  %vm7244_vm9 = vcmp.eq.s32.totalorder %v5397_v17, %v5381_v12  ;;  %vm5565_vm7 = vcmp.eq.s32.totalorder %v5397_v17, %v5385_v13  ;;  %v7257_v56 = vand.u32 4294901760, %v5504_v39  ;;  %4154 = vmatpush3.msk.msra.mxu0 %vm7238_vm11, %v7298_v22 }
  0x60   : > { %v7362_v55 = vsel %vm5565_vm7, 4294967295, %v7361_v55  ;;  %v439_v57 = vand.u32 4294901760, %v438_v49  ;;  %v459_v58 = vsub.f32 %v5494_v35, %v7258_v52  ;;  %v3500_v59 = vsel %vm7244_vm9, 1.0, %v7314_v2  ;;  %4155 = vmatprep.subr.mxu0 %v7314_v2 }
  0x61   : > { %vm7247_vm5 = vcmp.eq.s32.totalorder %v5400_v18, %v5381_v12  ;;  %v453_v60 = vand.u32 4294901760, %v452_v46  ;;  %vm5590_vm11 = vcmp.eq.s32.totalorder %v5400_v18, %v5385_v13  ;;  %4156 = vmatpush3.msk.msra.mxu0 %vm7240_vm13, %v7298_v22  ;;  %v5600_v0 = vsub.f32 %v3500_v59, %v3500_v59 }
  0x62   : > { %v3499_v61 = vsel %vm7247_vm5, 1.0, %v7314_v2  ;;  %v7364_v62 = vsel %vm5590_vm11, 4294967295, %v7363_v62  ;;  %4179 = vmatpush3.msra.mxu1 %v439_v57  ;;  %v466_v1 = vsub.f32 %v5504_v39, %v7257_v56  ;;  %v7251_v4 = vand.u32 4294901760, %v5530_v45  ;;  %4157 = vmatprep.subr.mxu0 %v7314_v2 }
  0x63   : > { %vm7246_vm3 = vcmp.eq.s32.totalorder %v5403_v19, %v5381_v12  ;;  %4180 = vmatprep.subr.mxu1 %v7314_v2  ;;  %v460_v6 = vand.u32 4294901760, %v459_v58  ;;  %vm5616_vm13 = vcmp.eq.s32.totalorder %v5403_v19, %v5385_v13  ;;  %v7250_v27 = vand.u32 4294901760, %v5552_v51  ;;  %4158 = vmatpush3.msk.msra.mxu0 %vm7242_vm15, %v7298_v22 }
  0x64   : > { %v3498_v23 = vsel %vm7246_vm3, 1.0, %v7314_v2  ;;  %4181 = vmatpush3.msra.mxu1 %v446_v50  ;;  %v5625_v32 = vsub.f32 %v3499_v61, %v3499_v61  ;;  %v473_v33 = vsub.f32 %v5530_v45, %v7251_v4  ;;  %vm7243_vm1 = vcmp.eq.s32.totalorder %v5471_v31, %v5381_v12  ;;  %4159 = vmatprep.subr.mxu0 %v7314_v2 }
  0x65   : > { %v7249_v37 = vand.u32 4294901760, %v5559_v54  ;;  %4182 = vmatprep.subr.mxu1 %v7314_v2  ;;  %v480_v43 = vsub.f32 %v5552_v51, %v7250_v27  ;;  %v3497_v44 = vsel %vm7243_vm1, 1.0, %v7314_v2  ;;  %vm5644_vm15 = vcmp.eq.s32.totalorder %v5471_v31, %v5385_v13  ;;  %4160 = vmatpush3.msk.msra.mxu0 %vm7244_vm9, %v7298_v22 }
  0x66   : > { %v5649_v47 = vadd.s32 24, %v5358_v3  ;;  %4183 = vmatpush3.msra.mxu1 %v453_v60  ;;  %v467_v49 = vand.u32 4294901760, %v466_v1  ;;  %v5655_v50 = vsub.f32 %v3498_v23, %v3498_v23  ;;  %v7253_v57 = vand.u32 4294901760, %v5600_v0  ;;  %4161 = vmatprep.subr.mxu0 %v7314_v2 }
  0x67   : > { %v5659_v58 = vsub.f32 %v220_v53, %v5594_v63  ;;  %4184 = vmatprep.subr.mxu1 %v7314_v2  ;;  %v487_v59 = vsub.f32 %v5559_v54, %v7249_v37  ;;  %v7369_v60 = vmov 0  ;;  %v5675_v53 = vadd.s32 16, %v5358_v3  ;;  %4162 = vmatpush3.msk.msra.mxu0 %vm7247_vm5, %v7298_v22 }
  0x68   : > { %vm7248_vm1 = vcmp.eq.s32.totalorder %v5649_v47, %v5381_v12  ;;  %vm5670_vm9 = vcmp.eq.s32.totalorder %v5649_v47, %v5385_v13  ;;  %4185 = vmatpush3.msra.mxu1 %v460_v6  ;;  %v474_v61 = vand.u32 4294901760, %v473_v33  ;;  %v5681_v1 = vsub.f32 %v3497_v44, %v3497_v44  ;;  %4163 = vmatprep.subr.mxu0 %v7314_v2 }
  0x69   : > { %v7370_v60 = vsel %vm5670_vm9, 4294967295, %v7369_v60  ;;  %v3496_v23 = vsel %vm7248_vm1, 1.0, %v7314_v2  ;;  %v7255_v7 = vand.u32 4294901760, %v5625_v32  ;;  %4186 = vmatprep.subr.mxu1 %v7314_v2  ;;  %v481_v6 = vand.u32 4294901760, %v480_v43 }
  0x6a   : > { %vm7254_vm3 = vcmp.eq.s32.totalorder %v5675_v53, %v5381_v12  ;;  %vm5694_vm5 = vcmp.eq.s32.totalorder %v5675_v53, %v5385_v13  ;;  %v7371_v33 = vmov 0  ;;  %v5699_v44 = vadd.s32 8, %v5358_v3  ;;  %4187 = vmatpush3.msra.mxu1 %v467_v49 }
  0x6b   : > { %v7372_v33 = vsel %vm5694_vm5, 4294967295, %v7371_v33  ;;  %vm7373_vm1 = vcmp.eq.s32.totalorder %v5403_v19, %v5381_v12  ;;  %v5705_v37 = vsub.f32 %v3496_v23, %v3496_v23  ;;  %v494_v43 = vsub.f32 %v5600_v0, %v7253_v57  ;;  %4188 = vmatprep.subr.mxu1 %v7314_v2 }
  0x6c   : > { %4164 = vmatpush3.msk.msra.mxu0 %vm7373_vm1, %v7298_v22  ;;  %v3495_v27 = vsel %vm7254_vm3, 1.0, %v7314_v2  ;;  %v7262_v4 = vand.u32 4294901760, %v5655_v50  ;;  %v488_v49 = vand.u32 4294901760, %v487_v59  ;;  %v501_v23 = vsub.f32 %v5625_v32, %v7255_v7  ;;  %4189 = vmatpush3.msra.mxu1 %v474_v61 }
  0x6d   : > { %4165 = vmatprep.subr.mxu0 %v7314_v2  ;;  %vm7268_vm1 = vcmp.eq.s32.totalorder %v5699_v44, %v5381_v12  ;;  %vm5724_vm5 = vcmp.eq.s32.totalorder %v5699_v44, %v5385_v13  ;;  %v7374_v57 = vmov 0  ;;  %vm7377_vm3 = vcmp.eq.s32.totalorder %v5471_v31, %v5381_v12  ;;  %4190 = vmatprep.subr.mxu1 %v7314_v2 }
  0x6e   : > { %v7375_v57 = vsel %vm5724_vm5, 4294967295, %v7374_v57  ;;  %4166 = vmatpush3.msk.msra.mxu0 %vm7377_vm3, %v7298_v22  ;;  %v5732_v59 = vsub.f32 %v3495_v27, %v3495_v27  ;;  %v3494_v7 = vsel %vm7268_vm1, 1.0, %v7314_v2  ;;  %vm7267_vm9 = vcmp.eq.s32.totalorder %v5358_v3, %v5381_v12  ;;  %4191 = vmatpush3.msra.mxu1 %v481_v6 }
  0x6f   : > { %7376 = vst [vmem:[#allocation14_spill] sm:$0xff] %v7375_v57  ;;  %v7265_v56 = vand.u32 4294901760, %v5681_v1  ;;  %4167 = vmatprep.subr.mxu0 %v7314_v2  ;;  %v3493_v27 = vsel %vm7267_vm9, 1.0, %v7314_v2  ;;  %v5748_v61 = vand.u32 4294901760, %v5659_v58  ;;  %vm7378_vm3 = vcmp.eq.s32.totalorder %v5649_v47, %v5381_v12  ;;  %4192 = vmatprep.subr.mxu1 %v7314_v2 }
  0x70   : > { %4168 = vmatpush3.msk.msra.mxu0 %vm7378_vm3, %v7298_v22  ;;  %v495_v52 = vand.u32 4294901760, %v494_v43  ;;  %v5754_v41 = vsub.f32 %v3494_v7, %v3494_v7  ;;  %v508_v38 = vsub.f32 %v5655_v50, %v7262_v4  ;;  %4193 = vmatpush3.msra.mxu1 %v488_v49  ;;  %vm7379_vm3 = vcmp.eq.s32.totalorder %v5675_v53, %v5381_v12 }
  0x71   : > { %4169 = vmatprep.subr.mxu0 %v7314_v2  ;;  %v427_v6 = vsub.f32 %v5659_v58, %v5748_v61  ;;  %v502_v7 = vand.u32 4294901760, %v501_v23  ;;  %v5768_v43 = vsub.f32 %v3493_v27, %v3493_v27  ;;  %v515_v4 = vsub.f32 %v5681_v1, %v7265_v56  ;;  %4194 = vmatprep.subr.mxu1 %v7314_v2 }
  0x72   : > { %4170 = vmatpush3.msk.msra.mxu0 %vm7379_vm3, %v7298_v22  ;;  %v7266_v42 = vand.u32 4294901760, %v5732_v59  ;;  %4195 = vmatpush3.msra.mxu1 %v495_v52  ;;  %v509_v49 = vand.u32 4294901760, %v508_v38  ;;  %v7380_v27 = vand.u32 4294901760, %v5705_v37  ;;  %v535_v56 = vand.u32 4294901760, %v5754_v41 }
  0x73   : > { %4171 = vmatprep.subr.mxu0 %v7314_v2  ;;  %v5780_v23 = vand.u32 4294901760, %v427_v6  ;;  %4196 = vmatprep.subr.mxu1 %v7314_v2  ;;  %v516_v52 = vand.u32 4294901760, %v515_v4  ;;  %v542_v6 = vand.u32 4294901760, %v5768_v43  ;;  %vm7381_vm3 = vcmp.eq.s32.totalorder %v5365_v5, %v5381_v12 }
  0x74   : > { %4172 = vmatpush3.msk.msra.mxu0 %vm7268_vm1, %v7298_v22  ;;  %v522_v57 = vsub.f32 %v5705_v37, %v7380_v27  ;;  %4197 = vmatpush3.msra.mxu1 %v502_v7  ;;  %v529_v38 = vsub.f32 %v5732_v59, %v7266_v42  ;;  %v536_v27 = vsub.f32 %v5754_v41, %v535_v56  ;;  %vm7392_vm1 = vmmov 0  }
  0x75   : > { %4173 = vmatprep.subr.mxu0 %v7314_v2  ;;  %4198 = vmatprep.subr.mxu1 %v7314_v2  ;;  %v543_v42 = vsub.f32 %v5768_v43, %v542_v6 }
  0x76   : > { %4174 = vmatpush3.msk.msra.mxu0 %vm7267_vm9, %v7298_v22  ;;  %4199 = vmatpush3.msra.mxu1 %v509_v49  ;;  %v523_v7 = vand.u32 4294901760, %v522_v57  ;;  %v530_v4 = vand.u32 4294901760, %v529_v38  ;;  %v537_v57 = vand.u32 4294901760, %v536_v27  ;;  %vm7382_vm9 = vcmp.eq.s32.totalorder %v5370_v8, %v5381_v12 }
  0x77   : > { %4213 = vmatprep.subr.mxu0 %v7314_v2  ;;  %4176 = vmatmul.mubr.f32.vlgmr.msra.gmra.mxu0 %v5780_v23  ;;  %v544_v49 = vand.u32 4294901760, %v543_v42  ;;  %v7394_v42 = vand.u32 4294901760, %v5496_v36 }
  0x78   : > { %4200 = vmatprep.subr.mxu1 %v7314_v2  ;;  %4214 = vmatpush3.msra.mxu0 %v5496_v36  ;;  %v7398_v36 = vand.u32 4294901760, %v5460_v29 }
  0x79   : > { %4201 = vmatpush3.msra.mxu1 %v516_v52  ;;  %4215 = vmatprep.subr.mxu0 %v7314_v2  ;;  %v7396_v52 = vand.u32 4294901760, %v5440_v25 }
  0x7a   : > { %4202 = vmatprep.subr.mxu1 %v7314_v2  ;;  %4216 = vmatpush3.msra.mxu0 %v5440_v25  ;;  %v7400_v25 = vand.u32 4294901760, %v5494_v35 }
  0x7b   : > { %4203 = vmatpush3.msra.mxu1 %v523_v7  ;;  %4217 = vmatprep.subr.mxu0 %v7314_v2 }
  0x7c   : > { %4204 = vmatprep.subr.mxu1 %v7314_v2  ;;  %4218 = vmatpush3.msra.mxu0 %v5460_v29  ;;  %v7402_v29 = vand.u32 4294901760, %v5504_v39 }
  0x7d   : > { %4205 = vmatpush3.msra.mxu1 %v530_v4  ;;  %4219 = vmatprep.subr.mxu0 %v7314_v2  ;;  %v3516_v4 = vsel %vm5565_vm7, 1.0, %v7314_v2 }
  0x7e   : > { %4206 = vmatprep.subr.mxu1 %v7314_v2  ;;  %4220 = vmatpush3.msra.mxu0 %v5494_v35  ;;  %v7404_v35 = vand.u32 4294901760, %v5530_v45 }
  0x7f   : > { %4207 = vmatpush3.msra.mxu1 %v537_v57  ;;  %4221 = vmatprep.subr.mxu0 %v7314_v2 }
  0x80   : > { %4208 = vmatprep.subr.mxu1 %v7314_v2  ;;  %4222 = vmatpush3.msra.mxu0 %v5504_v39  ;;  %v7406_v39 = vand.u32 4294901760, %v5552_v51 }
  0x81   : > { %4209 = vmatpush3.msra.mxu1 %v544_v49  ;;  %4223 = vmatprep.subr.mxu0 %v7314_v2 }
  0x82   : > { %4211 = vmatmul.mubr.f32.vlgmr.msra.gmra.mxu1 %v5594_v63  ;;  %4248 = vmatprep.subr.mxu1 %v7314_v2 }
  0x83   : > { %4249 = vmatpush3.msk.msra.mxu1 %vm7381_vm3, %v7298_v22  ;;  %4224 = vmatpush3.msra.mxu0 %v5530_v45  ;;  %vm7383_vm3 = vcmp.eq.s32.totalorder %v5373_v9, %v5381_v12  ;;  %v7420_v45 = vand.u32 4294901760, %v5732_v59 }
  0x84   : > { %4250 = vmatprep.subr.mxu1 %v7314_v2  ;;  %4225 = vmatprep.subr.mxu0 %v7314_v2 }
  0x85   : > { %4251 = vmatpush3.msk.msra.mxu1 %vm7382_vm9, %v7298_v22  ;;  %4226 = vmatpush3.msra.mxu0 %v5552_v51  ;;  %vm7384_vm9 = vcmp.eq.s32.totalorder %v5376_v10, %v5381_v12  ;;  %v3522_v51 = vsel %vm5433_vm6, 1.0, %v7314_v2 }
  0x86   : > { %4252 = vmatprep.subr.mxu1 %v7314_v2  ;;  %4227 = vmatprep.subr.mxu0 %v7314_v2 }
  0x87   : > { %4253 = vmatpush3.msk.msra.mxu1 %vm7383_vm3, %v7298_v22  ;;  %4228 = vmatpush3.msra.mxu0 %v5559_v54  ;;  %vm7385_vm3 = vcmp.eq.s32.totalorder %v5379_v11, %v5381_v12 }
  0x88   : > { %4254 = vmatprep.subr.mxu1 %v7314_v2  ;;  %4229 = vmatprep.subr.mxu0 %v7314_v2 }
  0x89   : > { %4255 = vmatpush3.msk.msra.mxu1 %vm7384_vm9, %v7298_v22  ;;  %4230 = vmatpush3.msra.mxu0 %v5600_v0  ;;  %vm7386_vm9 = vcmp.eq.s32.totalorder %v5388_v14, %v5381_v12 }
  0x8a   : > { %4256 = vmatprep.subr.mxu1 %v7314_v2  ;;  %4231 = vmatprep.subr.mxu0 %v7314_v2 }
  0x8b   : > { %4257 = vmatpush3.msk.msra.mxu1 %vm7385_vm3, %v7298_v22  ;;  %4232 = vmatpush3.msra.mxu0 %v5625_v32  ;;  %vm7387_vm3 = vcmp.eq.s32.totalorder %v5391_v15, %v5381_v12 }
  0x8c   : > { %4258 = vmatprep.subr.mxu1 %v7314_v2  ;;  %4233 = vmatprep.subr.mxu0 %v7314_v2 }
  0x8d   : > { %4259 = vmatpush3.msk.msra.mxu1 %vm7386_vm9, %v7298_v22  ;;  %4234 = vmatpush3.msra.mxu0 %v5655_v50  ;;  %vm7388_vm9 = vcmp.eq.s32.totalorder %v5394_v16, %v5381_v12 }
  0x8e   : > { %4260 = vmatprep.subr.mxu1 %v7314_v2  ;;  %4235 = vmatprep.subr.mxu0 %v7314_v2 }
  0x8f   : > { %4261 = vmatpush3.msk.msra.mxu1 %vm7387_vm3, %v7298_v22  ;;  %4236 = vmatpush3.msra.mxu0 %v5681_v1  ;;  %vm7389_vm3 = vcmp.eq.s32.totalorder %v5397_v17, %v5381_v12 }
  0x90   : > { %4262 = vmatprep.subr.mxu1 %v7314_v2  ;;  %4237 = vmatprep.subr.mxu0 %v7314_v2 }
  0x91   : > { %4263 = vmatpush3.msk.msra.mxu1 %vm7388_vm9, %v7298_v22  ;;  %4238 = vmatpush3.msra.mxu0 %v5705_v37  ;;  %vm7390_vm9 = vcmp.eq.s32.totalorder %v5400_v18, %v5381_v12 }
  0x92   : > { %4264 = vmatprep.subr.mxu1 %v7314_v2  ;;  %4239 = vmatprep.subr.mxu0 %v7314_v2 }
  0x93   : > { %4265 = vmatpush3.msk.msra.mxu1 %vm7389_vm3, %v7298_v22  ;;  %4240 = vmatpush3.msra.mxu0 %v5732_v59  ;;  %vm7391_vm3 = vcmp.eq.s32.totalorder %v5403_v19, %v5381_v12 }
  0x94   : > { %4266 = vmatprep.subr.mxu1 %v7314_v2  ;;  %4241 = vmatprep.subr.mxu0 %v7314_v2 }
  0x95   : > { %4267 = vmatpush3.msk.msra.mxu1 %vm7390_vm9, %v7298_v22  ;;  %4242 = vmatpush3.msra.mxu0 %v5754_v41  ;;  %vm7393_vm9 = vcmp.eq.s32.totalorder %v5471_v31, %v5381_v12  ;;  %v3521_v41 = vsel %vm5452_vm8, 1.0, %v7314_v2 }
  0x96   : > { %4268 = vmatprep.subr.mxu1 %v7314_v2  ;;  %4243 = vmatprep.subr.mxu0 %v7314_v2 }
  0x97   : > { %4269 = vmatpush3.msk.msra.mxu1 %vm7391_vm3, %v7298_v22  ;;  %4244 = vmatpush3.msra.mxu0 %v5768_v43  ;;  %vm7395_vm3 = vcmp.eq.s32.totalorder %v5649_v47, %v5381_v12 }
  0x98   : > { %4245 = vmatprep.mubr.msk.f32.mxu0 %vm7392_vm1, %v7314_v2  ;;  %4270 = vmatprep.subr.mxu1 %v7314_v2 }
  0x99   : > { %4246 = vmatmul.mubr.f32.vlgmr.msra.gmra.mxu0 %v5659_v58  ;;  %4271 = vmatpush3.msk.msra.mxu1 %vm7393_vm9, %v7298_v22  ;;  %vm7397_vm9 = vcmp.eq.s32.totalorder %v5675_v53, %v5381_v12 }
  0x9a   : > { %4283 = vmatprep.subr.mxu0 %v7314_v2  ;;  %4272 = vmatprep.subr.mxu1 %v7314_v2 }
  0x9b   : > { %4284 = vmatpush3.msra.mxu0 %v7394_v42  ;;  %4273 = vmatpush3.msk.msra.mxu1 %vm7395_vm3, %v7298_v22  ;;  %vm7399_vm3 = vcmp.eq.s32.totalorder %v5699_v44, %v5381_v12 }
  0x9c   : > { %4285 = vmatprep.subr.mxu0 %v7314_v2  ;;  %4274 = vmatprep.subr.mxu1 %v7314_v2 }
  0x9d   : > { %4286 = vmatpush3.msra.mxu0 %v7396_v52  ;;  %4275 = vmatpush3.msk.msra.mxu1 %vm7397_vm9, %v7298_v22  ;;  %vm7401_vm9 = vcmp.eq.s32.totalorder %v5358_v3, %v5381_v12 }
  0x9e   : > { %4287 = vmatprep.subr.mxu0 %v7314_v2  ;;  %4276 = vmatprep.subr.mxu1 %v7314_v2 }
  0x9f   : > { %4288 = vmatpush3.msra.mxu0 %v7398_v36  ;;  %4277 = vmatpush3.msk.msra.mxu1 %vm7399_vm3, %v7298_v22  ;;  %vm7403_vm3 = vcmp.eq.s32.totalorder %v5365_v5, %v5381_v12  ;;  %v7408_v5 = vand.u32 4294901760, %v5559_v54  ;;  %v6058_v54 = vsub.f32 %v3522_v51, %v3522_v51  ;;  %v3515_v36 = vsel %vm5590_vm11, 1.0, %v7314_v2 }
  0xa0   : > { %4289 = vmatprep.subr.mxu0 %v7314_v2  ;;  %4278 = vmatprep.subr.mxu1 %v7314_v2 }
  0xa1   : > { %4290 = vmatpush3.msra.mxu0 %v7400_v25  ;;  %4279 = vmatpush3.msk.msra.mxu1 %vm7401_vm9, %v7298_v22  ;;  %vm7405_vm9 = vcmp.eq.s32.totalorder %v5370_v8, %v5381_v12  ;;  %v7410_v8 = vand.u32 4294901760, %v5600_v0  ;;  %v6075_v0 = vsub.f32 %v3521_v41, %v3521_v41 }
  0xa2   : > { %4280 = vmatprep.mubr.msk.f32.mxu1 %vm7392_vm1, %v7314_v2  ;;  %4291 = vmatprep.subr.mxu0 %v7314_v2 }
  0xa3   : > { %4281 = vmatmul.mubr.f32.vlgmr.msra.gmra.mxu1 %v5748_v61  ;;  %4292 = vmatpush3.msra.mxu0 %v7402_v29  ;;  %v6111_v59 = vand.u32 4294901760, %v6075_v0 }
  0xa4   : > { %4318 = vmatprep.subr.mxu1 %v7314_v2  ;;  %4293 = vmatprep.subr.mxu0 %v7314_v2 }
  0xa5   : > { %4319 = vmatpush3.msk.msra.mxu1 %vm7403_vm3, %v7298_v22  ;;  %4294 = vmatpush3.msra.mxu0 %v7404_v35  ;;  %vm7407_vm3 = vcmp.eq.s32.totalorder %v5373_v9, %v5381_v12  ;;  %v7412_v9 = vand.u32 4294901760, %v5625_v32  ;;  %v3519_v32 = vsel %vm5486_vm12, 1.0, %v7314_v2  ;;  %v1100_v57 = vsub.f32 %v6075_v0, %v6111_v59 }
  0xa6   : > { %4320 = vmatprep.subr.mxu1 %v7314_v2  ;;  %4295 = vmatprep.subr.mxu0 %v7314_v2  ;;  %v6113_v43 = vsub.f32 %v3519_v32, %v3519_v32  ;;  %v6171_v35 = vsub.f32 %v3516_v4, %v3516_v4  ;;  %v7441_v4 = vmov 0 }
  0xa7   : > { %4321 = vmatpush3.msk.msra.mxu1 %vm7405_vm9, %v7298_v22  ;;  %4296 = vmatpush3.msra.mxu0 %v7406_v39  ;;  %vm7409_vm9 = vcmp.eq.s32.totalorder %v5376_v10, %v5381_v12  ;;  %v7414_v10 = vand.u32 4294901760, %v5655_v50  ;;  %v3514_v39 = vsel %vm5616_vm13, 1.0, %v7314_v2 }
  0xa8   : > { %4322 = vmatprep.subr.mxu1 %v7314_v2  ;;  %4297 = vmatprep.subr.mxu0 %v7314_v2  ;;  %v6151_v49 = vand.u32 4294901760, %v6113_v43 }
  0xa9   : > { %4323 = vmatpush3.msk.msra.mxu1 %vm7407_vm3, %v7298_v22  ;;  %4298 = vmatpush3.msra.mxu0 %v7408_v5  ;;  %vm7411_vm3 = vcmp.eq.s32.totalorder %v5379_v11, %v5381_v12  ;;  %v7416_v11 = vand.u32 4294901760, %v5681_v1  ;;  %v3518_v1 = vsel %vm5510_vm14, 1.0, %v7314_v2  ;;  %v6182_v5 = vand.u32 4294901760, %v1100_v57 }
  0xaa   : > { %4324 = vmatprep.subr.mxu1 %v7314_v2  ;;  %4299 = vmatprep.subr.mxu0 %v7314_v2  ;;  %v6117_v38 = vsub.f32 %v3518_v1, %v3518_v1 }
  0xab   : > { %4325 = vmatpush3.msk.msra.mxu1 %vm7409_vm9, %v7298_v22  ;;  %4300 = vmatpush3.msra.mxu0 %v7410_v8  ;;  %vm7413_vm9 = vcmp.eq.s32.totalorder %v5388_v14, %v5381_v12  ;;  %v7418_v14 = vand.u32 4294901760, %v5705_v37  ;;  %7431 = vst [vmem:[#allocation18_spill] sm:$0xff] %v6182_v5  ;;  %v1114_v8 = vsub.f32 %v6113_v43, %v6151_v49 }
  0xac   : > { %4326 = vmatprep.subr.mxu1 %v7314_v2  ;;  %4301 = vmatprep.subr.mxu0 %v7314_v2  ;;  %v6158_v52 = vand.u32 4294901760, %v6117_v38 }
  0xad   : > { %4327 = vmatpush3.msk.msra.mxu1 %vm7411_vm3, %v7298_v22  ;;  %4302 = vmatpush3.msra.mxu0 %v7412_v9  ;;  %vm7415_vm3 = vcmp.eq.s32.totalorder %v5391_v15, %v5381_v12  ;;  %v3524_v15 = vsel %vm5409_vm2, 1.0, %v7314_v2  ;;  %v6218_v41 = vand.u32 4294901760, %v1114_v8 }
  0xae   : > { %4328 = vmatprep.subr.mxu1 %v7314_v2  ;;  %4303 = vmatprep.subr.mxu0 %v7314_v2 }
  0xaf   : > { %4329 = vmatpush3.msk.msra.mxu1 %vm7413_vm9, %v7298_v22  ;;  %4304 = vmatpush3.msra.mxu0 %v7414_v10  ;;  %vm7417_vm9 = vcmp.eq.s32.totalorder %v5394_v16, %v5381_v12  ;;  %v3523_v16 = vsel %vm5417_vm4, 1.0, %v7314_v2  ;;  %v6189_v10 = vsub.f32 %v3515_v36, %v3515_v36  ;;  %7436 = vst [vmem:[#allocation22_spill] sm:$0xff] %v6218_v41  ;;  %v7443_v36 = vld [vmem:[#allocation14_spill] sm:$0xff] }
  0xb0   : > { %4330 = vmatprep.subr.mxu1 %v7314_v2  ;;  %4305 = vmatprep.subr.mxu0 %v7314_v2 }
  0xb1   : > { %4331 = vmatpush3.msk.msra.mxu1 %vm7415_vm3, %v7298_v22  ;;  %4306 = vmatpush3.msra.mxu0 %v7416_v11  ;;  %vm7419_vm3 = vcmp.eq.s32.totalorder %v5397_v17, %v5381_v12  ;;  %v6029_v17 = vsub.f32 %v3524_v15, %v3524_v15  ;;  %v1121_v11 = vsub.f32 %v6117_v38, %v6158_v52  ;;  %v6223_v32 = vand.u32 4294901760, %v6189_v10 }
  0xb2   : > { %4332 = vmatprep.subr.mxu1 %v7314_v2  ;;  %4307 = vmatprep.subr.mxu0 %v7314_v2 }
  0xb3   : > { %4333 = vmatpush3.msk.msra.mxu1 %vm7417_vm9, %v7298_v22  ;;  %4308 = vmatpush3.msra.mxu0 %v7418_v14  ;;  %vm7421_vm9 = vcmp.eq.s32.totalorder %v5400_v18, %v5381_v12  ;;  %v6042_v18 = vsub.f32 %v3523_v16, %v3523_v16  ;;  %v3513_v14 = vsel %vm5644_vm15, 1.0, %v7314_v2  ;;  %v6207_v16 = vsub.f32 %v3514_v39, %v3514_v39 }
  0xb4   : > { %4334 = vmatprep.subr.mxu1 %v7314_v2  ;;  %4309 = vmatprep.subr.mxu0 %v7314_v2  ;;  %7437 = vst [vmem:[#allocation23_spill] sm:$0xff] %v6223_v32  ;;  %v6229_v1 = vand.u32 4294901760, %v1121_v11  ;;  %v1142_v39 = vsub.f32 %v6189_v10, %v6223_v32 }
  0xb5   : > { %4335 = vmatpush3.msk.msra.mxu1 %vm7419_vm3, %v7298_v22  ;;  %4310 = vmatpush3.msra.mxu0 %v7420_v45  ;;  %vm7422_vm3 = vcmp.eq.s32.totalorder %v5403_v19, %v5381_v12  ;;  %v6056_v19 = vand.u32 4294901760, %v6029_v17  ;;  %v6205_v45 = vand.u32 4294901760, %v6171_v35 }
  0xb6   : > { %4336 = vmatprep.subr.mxu1 %v7314_v2  ;;  %4311 = vmatprep.subr.mxu0 %v7314_v2  ;;  %7438 = vst [vmem:[#allocation24_spill] sm:$0xff] %v6229_v1 }
  0xb7   : > { %4337 = vmatpush3.msk.msra.mxu1 %vm7421_vm9, %v7298_v22  ;;  %4312 = vmatpush3.msra.mxu0 %v535_v56  ;;  %vm7423_vm9 = vcmp.eq.s32.totalorder %v5471_v31, %v5381_v12  ;;  %v3520_v56 = vsel %vm5466_vm10, 1.0, %v7314_v2  ;;  %v6073_v31 = vand.u32 4294901760, %v6042_v18  ;;  %v1079_v37 = vsub.f32 %v6029_v17, %v6056_v19  ;;  %7434 = vst [vmem:[#allocation21_spill] sm:$0xff] %v6205_v45 }
  0xb8   : > { %4338 = vmatprep.subr.mxu1 %v7314_v2  ;;  %4313 = vmatprep.subr.mxu0 %v7314_v2  ;;  %v6094_v50 = vsub.f32 %v3520_v56, %v3520_v56 }
  0xb9   : > { %4339 = vmatpush3.msk.msra.mxu1 %vm7422_vm3, %v7298_v22  ;;  %4314 = vmatpush3.msra.mxu0 %v542_v6  ;;  %vm7424_vm3 = vcmp.eq.s32.totalorder %v5649_v47, %v5381_v12  ;;  %v6092_v47 = vand.u32 4294901760, %v6058_v54  ;;  %v3517_v6 = vsel %vm5541_vm0, 1.0, %v7314_v2 }
  0xba   : > { %4315 = vmatprep.mubr.msk.f32.mxu0 %vm7392_vm1, %v7314_v2  ;;  %4340 = vmatprep.subr.mxu1 %v7314_v2  ;;  %v6134_v27 = vand.u32 4294901760, %v6094_v50  ;;  %v6153_v42 = vsub.f32 %v3517_v6, %v3517_v6  ;;  %v1135_v6 = vsub.f32 %v6171_v35, %v6205_v45 }
  0xbb   : > { %4316 = vmatmul.mubr.f32.vlgmr.msra.gmra.mxu0 %v5594_v63  ;;  %4341 = vmatpush3.msk.msra.mxu1 %vm7423_vm9, %v7298_v22  ;;  %vm7425_vm9 = vcmp.eq.s32.totalorder %v5675_v53, %v5381_v12  ;;  %v1086_v53 = vsub.f32 %v6042_v18, %v6073_v31  ;;  %v1093_v7 = vsub.f32 %v6058_v54, %v6092_v47 }
  0xbc   : > { %4353 = vmatprep.subr.mxu0 %v7314_v2  ;;  %4342 = vmatprep.subr.mxu1 %v7314_v2  ;;  %v1107_v29 = vsub.f32 %v6094_v50, %v6134_v27  ;;  %v6187_v9 = vand.u32 4294901760, %v6153_v42 }
  0xbd   : > { %4354 = vmatpush3.msk.msra.mxu0 %vm5409_vm2, %v7298_v22  ;;  %4343 = vmatpush3.msk.msra.mxu1 %vm7424_vm3, %v7298_v22  ;;  %vm7426_vm3 = vcmp.eq.s32.totalorder %v5699_v44, %v5381_v12  ;;  %v6129_v44 = vand.u32 4294901760, %v1079_v37  ;;  %v6167_v25 = vand.u32 4294901760, %v1093_v7  ;;  %v6225_v37 = vsub.f32 %v3513_v14, %v3513_v14 }
  0xbe   : > { %4355 = vmatprep.subr.mxu0 %v7314_v2  ;;  %4344 = vmatprep.subr.mxu1 %v7314_v2  ;;  %7432 = vst [vmem:[#allocation19_spill] sm:$0xff] %v6187_v9  ;;  %v6202_v15 = vand.u32 4294901760, %v1107_v29  ;;  %v1128_v56 = vsub.f32 %v6153_v42, %v6187_v9  ;;  %v6241_v7 = vand.u32 4294901760, %v6207_v16  ;;  %v3510_v29 = vsel %vm5724_vm5, 1.0, %v7314_v2 }
  0xbf   : > { %4356 = vmatpush3.msk.msra.mxu0 %vm5417_vm4, %v7298_v22  ;;  %4345 = vmatpush3.msk.msra.mxu1 %vm7425_vm9, %v7298_v22  ;;  %vm7427_vm9 = vcmp.eq.s32.totalorder %v5358_v3, %v5381_v12  ;;  %7428 = vst [vmem:[#allocation15_spill] sm:$0xff] %v6129_v44  ;;  %v6146_v12 = vand.u32 4294901760, %v1086_v53  ;;  %7430 = vst [vmem:[#allocation17_spill] sm:$0xff] %v6167_v25  ;;  %v6265_v8 = vand.u32 4294901760, %v6225_v37 }
  0xc0   : > { %4357 = vmatprep.subr.mxu0 %v7314_v2  ;;  %4346 = vmatprep.subr.mxu1 %v7314_v2  ;;  %7433 = vst [vmem:[#allocation20_spill] sm:$0xff] %v6202_v15  ;;  %7440 = vst [vmem:[#allocation25_spill] sm:$0xff] %v6241_v7 }
  0xc1   : > { %4358 = vmatpush3.msk.msra.mxu0 %vm5433_vm6, %v7298_v22  ;;  %4347 = vmatpush3.msk.msra.mxu1 %vm7426_vm3, %v7298_v22  ;;  %7429 = vst [vmem:[#allocation16_spill] sm:$0xff] %v6146_v12  ;;  %vm7435_vm3 = vnez %v7370_v60  ;;  %7445 = vst [vmem:[#allocation26_spill] sm:$0xff] %v6265_v8 }
  0xc2   : > { %4359 = vmatprep.subr.mxu0 %v7314_v2  ;;  %4348 = vmatprep.subr.mxu1 %v7314_v2  ;;  %v3512_v51 = vsel %vm7435_vm3, 1.0, %v7314_v2 }
  0xc3   : > { %4360 = vmatpush3.msk.msra.mxu0 %vm5452_vm8, %v7298_v22  ;;  %4349 = vmatpush3.msk.msra.mxu1 %vm7427_vm9, %v7298_v22  ;;  %vm7439_vm9 = vnez %v7372_v33  ;;  %v6249_v57 = vsub.f32 %v3512_v51, %v3512_v51  ;;  %v6278_v51 = vand.u32 4294901760, %v1135_v6  ;;  %v6293_v6 = vand.u32 4294901760, %v1142_v39 }
  0xc4   : > { %4350 = vmatprep.mubr.msk.f32.mxu1 %vm7392_vm1, %v7314_v2  ;;  %4361 = vmatprep.subr.mxu0 %v7314_v2  ;;  %v3511_v53 = vsel %vm7439_vm9, 1.0, %v7314_v2 }
  0xc5   : > { %4351 = vmatmul.mubr.f32.vlgmr.msra.gmra.mxu1 %v5594_v63  ;;  %4362 = vmatpush3.msk.msra.mxu0 %vm5466_vm10, %v7298_v22  ;;  %v6267_v11 = vsub.f32 %v3511_v53, %v3511_v53  ;;  %7446 = vst [vmem:[#allocation27_spill] sm:$0xff] %v6278_v51  ;;  %v6283_v53 = vand.u32 4294901760, %v6249_v57  ;;  %7448 = vst [vmem:[#allocation29_spill] sm:$0xff] %v6293_v6 }
  0xc6   : > { %4388 = vmatprep.subr.mxu1 %v7314_v2  ;;  %4363 = vmatprep.subr.mxu0 %v7314_v2 }
  0xc7   : > { %4389 = vmatpush3.msra.mxu1 %v6129_v44  ;;  %4364 = vmatpush3.msk.msra.mxu0 %vm5486_vm12, %v7298_v22  ;;  %7447 = vst [vmem:[#allocation28_spill] sm:$0xff] %v6283_v53 }
  0xc8   : > { %4390 = vmatprep.subr.mxu1 %v7314_v2  ;;  %4365 = vmatprep.subr.mxu0 %v7314_v2 }
  0xc9   : > { %4391 = vmatpush3.msra.mxu1 %v6146_v12  ;;  %4366 = vmatpush3.msk.msra.mxu0 %vm5510_vm14, %v7298_v22 }
  0xca   : > { %4392 = vmatprep.subr.mxu1 %v7314_v2  ;;  %4367 = vmatprep.subr.mxu0 %v7314_v2 }
  0xcb   : > { %4393 = vmatpush3.msra.mxu1 %v6167_v25  ;;  %4368 = vmatpush3.msk.msra.mxu0 %vm5541_vm0, %v7298_v22 }
  0xcc   : > { %4394 = vmatprep.subr.mxu1 %v7314_v2  ;;  %4369 = vmatprep.subr.mxu0 %v7314_v2 }
  0xcd   : > { %4395 = vmatpush3.msra.mxu1 %v6182_v5  ;;  %4370 = vmatpush3.msk.msra.mxu0 %vm5565_vm7, %v7298_v22  ;;  %vm6245_vm7 = vcmp.eq.s32.totalorder %v5358_v3, %v5385_v13  ;;  %v6260_v13 = vand.u32 4294901760, %v1128_v56  ;;  %v1149_v56 = vsub.f32 %v6207_v16, %v6241_v7  ;;  %v6285_v3 = vsub.f32 %v3510_v29, %v3510_v29 }
  0xce   : > { %4396 = vmatprep.subr.mxu1 %v7314_v2  ;;  %4371 = vmatprep.subr.mxu0 %v7314_v2  ;;  %v7442_v4 = vsel %vm6245_vm7, 4294967295, %v7441_v4  ;;  %v3509_v14 = vsel %vm6245_vm7, 1.0, %v7314_v2 }
  0xcf   : > { %4397 = vmatpush3.msra.mxu1 %v6202_v15  ;;  %4372 = vmatpush3.msk.msra.mxu0 %vm5590_vm11, %v7298_v22  ;;  %7444 = vst [vmem:[#allocation14_spill] sm:$0xff] %v6260_v13  ;;  %v6300_v29 = vsub.f32 %v3509_v14, %v3509_v14  ;;  %v6308_v39 = vand.u32 4294901760, %v1149_v56  ;;  %v6313_v15 = vand.u32 4294901760, %v6285_v3 }
  0xd0   : > { %4398 = vmatprep.subr.mxu1 %v7314_v2  ;;  %4373 = vmatprep.subr.mxu0 %v7314_v2 }
  0xd1   : > { %4399 = vmatpush3.msra.mxu1 %v6218_v41  ;;  %4374 = vmatpush3.msk.msra.mxu0 %vm5616_vm13, %v7298_v22  ;;  %v6298_v41 = vand.u32 4294901760, %v6267_v11  ;;  %7450 = vst [vmem:[#allocation31_spill] sm:$0xff] %v6308_v39  ;;  %7451 = vst [vmem:[#allocation32_spill] sm:$0xff] %v6313_v15 }
  0xd2   : > { %4400 = vmatprep.subr.mxu1 %v7314_v2  ;;  %4375 = vmatprep.subr.mxu0 %v7314_v2 }
  0xd3   : > { %4401 = vmatpush3.msra.mxu1 %v6229_v1  ;;  %4376 = vmatpush3.msk.msra.mxu0 %vm5644_vm15, %v7298_v22  ;;  %v1156_v1 = vsub.f32 %v6225_v37, %v6265_v8  ;;  %7449 = vst [vmem:[#allocation30_spill] sm:$0xff] %v6298_v41  ;;  %v1170_v56 = vsub.f32 %v6267_v11, %v6298_v41 }
  0xd4   : > { %4402 = vmatprep.subr.mxu1 %v7314_v2  ;;  %4377 = vmatprep.subr.mxu0 %v7314_v2 }
  0xd5   : > { %4403 = vmatpush3.msra.mxu1 %v6260_v13  ;;  %4378 = vmatpush3.msk.msra.mxu0 %vm7435_vm3, %v7298_v22  ;;  %v1163_v13 = vsub.f32 %v6249_v57, %v6283_v53  ;;  %v6321_v14 = vand.u32 4294901760, %v1156_v1  ;;  %v1177_v1 = vsub.f32 %v6285_v3, %v6313_v15  ;;  %v6343_v5 = vand.u32 4294901760, %v1170_v56 }
  0xd6   : > { %4404 = vmatprep.subr.mxu1 %v7314_v2  ;;  %4379 = vmatprep.subr.mxu0 %v7314_v2 }
  0xd7   : > { %4405 = vmatpush3.msra.mxu1 %v6278_v51  ;;  %4380 = vmatpush3.msk.msra.mxu0 %vm7439_vm9, %v7298_v22  ;;  %7452 = vst [vmem:[#allocation33_spill] sm:$0xff] %v6321_v14  ;;  %v6326_v51 = vand.u32 4294901760, %v6300_v29  ;;  %7455 = vst [vmem:[#allocation36_spill] sm:$0xff] %v6343_v5 }
  0xd8   : > { %4406 = vmatprep.subr.mxu1 %v7314_v2  ;;  %4381 = vmatprep.subr.mxu0 %v7314_v2 }
  0xd9   : > { %4407 = vmatpush3.msra.mxu1 %v6293_v6  ;;  %4382 = vmatpush3.msk.msra.mxu0 %vm5724_vm5, %v7298_v22  ;;  %7453 = vst [vmem:[#allocation34_spill] sm:$0xff] %v6326_v51  ;;  %v6334_v6 = vand.u32 4294901760, %v1163_v13  ;;  %v6351_v13 = vand.u32 4294901760, %v1177_v1 }
  0xda   : > { %4408 = vmatprep.subr.mxu1 %v7314_v2  ;;  %4383 = vmatprep.subr.mxu0 %v7314_v2 }
  0xdb   : > { %4409 = vmatpush3.msra.mxu1 %v6308_v39  ;;  %4384 = vmatpush3.msk.msra.mxu0 %vm6245_vm7, %v7298_v22  ;;  %7454 = vst [vmem:[#allocation35_spill] sm:$0xff] %v6334_v6  ;;  %v1184_v39 = vsub.f32 %v6300_v29, %v6326_v51  ;;  %7456 = vst [vmem:[#allocation37_spill] sm:$0xff] %v6351_v13 }
  0xdc   : > { %4410 = vmatprep.subr.mxu1 %v7314_v2  ;;  %4385 = vmatprep.mubr.msk.f32.mxu0 %vm7392_vm1, %v7314_v2 }
  0xdd   : > { %4411 = vmatpush3.msra.mxu1 %v6321_v14  ;;  %4423 = vmatprep.subr.mxu0 %v7314_v2  ;;  %v6357_v56 = vand.u32 4294901760, %v1184_v39  ;;  %v7463_v39 = vld [vmem:[#allocation22_spill] sm:$0xff] }
  0xde   : > { %4386 = vmatmul.mubr.f32.vlgmr.msra.gmra.mxu0 %v5780_v23  ;;  %4412 = vmatprep.subr.mxu1 %v7314_v2  ;;  %v7462_v23 = vld [vmem:[#allocation20_spill] sm:$0xff] }
  0xdf   : > { %4424 = vmatpush3.msra.mxu0 %v6029_v17  ;;  %4413 = vmatpush3.msra.mxu1 %v6334_v6  ;;  %7457 = vst [vmem:[#allocation38_spill] sm:$0xff] %v6357_v56 }
  0xe0   : > { %4425 = vmatprep.subr.mxu0 %v7314_v2  ;;  %4414 = vmatprep.subr.mxu1 %v7314_v2 }
  0xe1   : > { %4426 = vmatpush3.msra.mxu0 %v6042_v18  ;;  %4415 = vmatpush3.msra.mxu1 %v6343_v5 }
  0xe2   : > { %4427 = vmatprep.subr.mxu0 %v7314_v2  ;;  %4416 = vmatprep.subr.mxu1 %v7314_v2 }
  0xe3   : > { %4428 = vmatpush3.msra.mxu0 %v6058_v54  ;;  %4417 = vmatpush3.msra.mxu1 %v6351_v13 }
  0xe4   : > { %4429 = vmatprep.subr.mxu0 %v7314_v2  ;;  %4418 = vmatprep.subr.mxu1 %v7314_v2 }
  0xe5   : > { %4430 = vmatpush3.msra.mxu0 %v6075_v0  ;;  %4419 = vmatpush3.msra.mxu1 %v6357_v56 }
  0xe6   : > { %4420 = vmatprep.mubr.msk.f32.mxu1 %vm7392_vm1, %v7314_v2  ;;  %4431 = vmatprep.subr.mxu0 %v7314_v2 }
  0xe7   : > { %4421 = vmatmul.mubr.f32.vlgmr.msra.gmra.mxu1 %v5594_v63  ;;  %4432 = vmatpush3.msra.mxu0 %v6094_v50 }
  0xe8   : > { %4458 = vmatprep.subr.mxu1 %v7314_v2  ;;  %4433 = vmatprep.subr.mxu0 %v7314_v2 }
  0xe9   : > { %4459 = vmatpush3.msk.msra.mxu1 %vm5409_vm2, %v7298_v22  ;;  %4434 = vmatpush3.msra.mxu0 %v6113_v43 }
  0xea   : > { %4460 = vmatprep.subr.mxu1 %v7314_v2  ;;  %4435 = vmatprep.subr.mxu0 %v7314_v2 }
  0xeb   : > { %4461 = vmatpush3.msk.msra.mxu1 %vm5417_vm4, %v7298_v22  ;;  %4436 = vmatpush3.msra.mxu0 %v6117_v38 }
  0xec   : > { %4462 = vmatprep.subr.mxu1 %v7314_v2  ;;  %4437 = vmatprep.subr.mxu0 %v7314_v2 }
  0xed   : > { %4463 = vmatpush3.msk.msra.mxu1 %vm5433_vm6, %v7298_v22  ;;  %4438 = vmatpush3.msra.mxu0 %v6153_v42 }
  0xee   : > { %4464 = vmatprep.subr.mxu1 %v7314_v2  ;;  %4439 = vmatprep.subr.mxu0 %v7314_v2 }
  0xef   : > { %4465 = vmatpush3.msk.msra.mxu1 %vm5452_vm8, %v7298_v22  ;;  %4440 = vmatpush3.msra.mxu0 %v6171_v35 }
  0xf0   : > { %4466 = vmatprep.subr.mxu1 %v7314_v2  ;;  %4441 = vmatprep.subr.mxu0 %v7314_v2 }
  0xf1   : > { %4467 = vmatpush3.msk.msra.mxu1 %vm5466_vm10, %v7298_v22  ;;  %4442 = vmatpush3.msra.mxu0 %v6189_v10 }
  0xf2   : > { %4468 = vmatprep.subr.mxu1 %v7314_v2  ;;  %4443 = vmatprep.subr.mxu0 %v7314_v2 }
  0xf3   : > { %4469 = vmatpush3.msk.msra.mxu1 %vm5486_vm12, %v7298_v22  ;;  %4444 = vmatpush3.msra.mxu0 %v6207_v16  ;;  %vm7458_vm12 = vnez %v7362_v55 }
  0xf4   : > { %4470 = vmatprep.subr.mxu1 %v7314_v2  ;;  %4445 = vmatprep.subr.mxu0 %v7314_v2 }
  0xf5   : > { %4471 = vmatpush3.msk.msra.mxu1 %vm5510_vm14, %v7298_v22  ;;  %4446 = vmatpush3.msra.mxu0 %v6225_v37 }
  0xf6   : > { %4472 = vmatprep.subr.mxu1 %v7314_v2  ;;  %4447 = vmatprep.subr.mxu0 %v7314_v2 }
  0xf7   : > { %4473 = vmatpush3.msk.msra.mxu1 %vm5541_vm0, %v7298_v22  ;;  %4448 = vmatpush3.msra.mxu0 %v6249_v57 }
  0xf8   : > { %4474 = vmatprep.subr.mxu1 %v7314_v2  ;;  %4449 = vmatprep.subr.mxu0 %v7314_v2 }
  0xf9   : > { %4475 = vmatpush3.msk.msra.mxu1 %vm7458_vm12, %v7298_v22  ;;  %4450 = vmatpush3.msra.mxu0 %v6267_v11 }
  0xfa   : > { %4476 = vmatprep.subr.mxu1 %v7314_v2  ;;  %4451 = vmatprep.subr.mxu0 %v7314_v2 }
  0xfb   : > { %4477 = vmatpush3.msk.msra.mxu1 %vm5590_vm11, %v7298_v22  ;;  %4452 = vmatpush3.msra.mxu0 %v6285_v3 }
  0xfc   : > { %4478 = vmatprep.subr.mxu1 %v7314_v2  ;;  %4453 = vmatprep.subr.mxu0 %v7314_v2 }
  0xfd   : > { %4479 = vmatpush3.msk.msra.mxu1 %vm5616_vm13, %v7298_v22  ;;  %4454 = vmatpush3.msra.mxu0 %v6300_v29 }
  0xfe   : > { %4455 = vmatprep.mubr.msk.f32.mxu0 %vm7392_vm1, %v7314_v2  ;;  %4480 = vmatprep.subr.mxu1 %v7314_v2 }
  0xff   : > { %4456 = vmatmul.mubr.f32.vlgmr.msra.gmra.mxu0 %v5659_v58  ;;  %4481 = vmatpush3.msk.msra.mxu1 %vm5644_vm15, %v7298_v22  ;;  %v7461_v58 = vld [vmem:[#allocation18_spill] sm:$0xff] }
 0x100   : > { %4493 = vmatprep.subr.mxu0 %v7314_v2  ;;  %4482 = vmatprep.subr.mxu1 %v7314_v2 }
 0x101   : > { %4494 = vmatpush3.msra.mxu0 %v6056_v19  ;;  %4483 = vmatpush3.msk.msra.mxu1 %vm7435_vm3, %v7298_v22 }
 0x102   : > { %4495 = vmatprep.subr.mxu0 %v7314_v2  ;;  %4484 = vmatprep.subr.mxu1 %v7314_v2 }
 0x103   : > { %4496 = vmatpush3.msra.mxu0 %v6073_v31  ;;  %4485 = vmatpush3.msk.msra.mxu1 %vm7439_vm9, %v7298_v22 }
 0x104   : > { %4497 = vmatprep.subr.mxu0 %v7314_v2  ;;  %4486 = vmatprep.subr.mxu1 %v7314_v2 }
 0x105   : > { %4498 = vmatpush3.msra.mxu0 %v6092_v47  ;;  %4487 = vmatpush3.msk.msra.mxu1 %vm5724_vm5, %v7298_v22 }
 0x106   : > { %4499 = vmatprep.subr.mxu0 %v7314_v2  ;;  %4488 = vmatprep.subr.mxu1 %v7314_v2 }
 0x107   : > { %4500 = vmatpush3.msra.mxu0 %v6111_v59  ;;  %4489 = vmatpush3.msk.msra.mxu1 %vm6245_vm7, %v7298_v22 }
 0x108   : > { %4490 = vmatprep.mubr.msk.f32.mxu1 %vm7392_vm1, %v7314_v2  ;;  %4501 = vmatprep.subr.mxu0 %v7314_v2 }
 0x109   : > { %4491 = vmatmul.mubr.f32.vlgmr.msra.gmra.mxu1 %v5748_v61  ;;  %4502 = vmatpush3.msra.mxu0 %v6134_v27 }
 0x10a   : > { %4528 = vmatprep.subr.mxu1 %v7314_v2  ;;  %4503 = vmatprep.subr.mxu0 %v7314_v2 }
 0x10b   : > { %4529 = vmatpush3.msk.msra.mxu1 %vm5409_vm2, %v7298_v22  ;;  %4504 = vmatpush3.msra.mxu0 %v6151_v49 }
 0x10c   : > { %4530 = vmatprep.subr.mxu1 %v7314_v2  ;;  %4505 = vmatprep.subr.mxu0 %v7314_v2 }
 0x10d   : > { %4531 = vmatpush3.msk.msra.mxu1 %vm5417_vm4, %v7298_v22  ;;  %4506 = vmatpush3.msra.mxu0 %v6158_v52 }
 0x10e   : > { %4532 = vmatprep.subr.mxu1 %v7314_v2  ;;  %4507 = vmatprep.subr.mxu0 %v7314_v2 }
 0x10f   : > { %4533 = vmatpush3.msk.msra.mxu1 %vm5433_vm6, %v7298_v22  ;;  %4508 = vmatpush3.msra.mxu0 %v6187_v9  ;;  %vm7459_vm6 = vnez %v7356_v34 }
 0x110   : > { %4534 = vmatprep.subr.mxu1 %v7314_v2  ;;  %4509 = vmatprep.subr.mxu0 %v7314_v2 }
 0x111   : > { %4535 = vmatpush3.msk.msra.mxu1 %vm5452_vm8, %v7298_v22  ;;  %4510 = vmatpush3.msra.mxu0 %v6205_v45 }
 0x112   : > { %4536 = vmatprep.subr.mxu1 %v7314_v2  ;;  %4511 = vmatprep.subr.mxu0 %v7314_v2 }
 0x113   : > { %4537 = vmatpush3.msk.msra.mxu1 %vm5466_vm10, %v7298_v22  ;;  %4512 = vmatpush3.msra.mxu0 %v6223_v32 }
 0x114   : > { %4538 = vmatprep.subr.mxu1 %v7314_v2  ;;  %4513 = vmatprep.subr.mxu0 %v7314_v2 }
 0x115   : > { %4539 = vmatpush3.msk.msra.mxu1 %vm7459_vm6, %v7298_v22  ;;  %4514 = vmatpush3.msra.mxu0 %v6241_v7  ;;  %v7469_v7 = vld [vmem:[#allocation13_spill] sm:$0xff] }
 0x116   : > { %4540 = vmatprep.subr.mxu1 %v7314_v2  ;;  %4515 = vmatprep.subr.mxu0 %v7314_v2 }
 0x117   : > { %4541 = vmatpush3.msk.msra.mxu1 %vm5510_vm14, %v7298_v22  ;;  %4516 = vmatpush3.msra.mxu0 %v6265_v8 }
 0x118   : > { %4542 = vmatprep.subr.mxu1 %v7314_v2  ;;  %4517 = vmatprep.subr.mxu0 %v7314_v2 }
 0x119   : > { %4543 = vmatpush3.msk.msra.mxu1 %vm5541_vm0, %v7298_v22  ;;  %4518 = vmatpush3.msra.mxu0 %v6283_v53 }
 0x11a   : > { %4544 = vmatprep.subr.mxu1 %v7314_v2  ;;  %4519 = vmatprep.subr.mxu0 %v7314_v2 }
 0x11b   : > { %4545 = vmatpush3.msk.msra.mxu1 %vm7458_vm12, %v7298_v22  ;;  %4520 = vmatpush3.msra.mxu0 %v6298_v41 }
 0x11c   : > { %4546 = vmatprep.subr.mxu1 %v7314_v2  ;;  %4521 = vmatprep.subr.mxu0 %v7314_v2 }
 0x11d   : > { %4547 = vmatpush3.msk.msra.mxu1 %vm5590_vm11, %v7298_v22  ;;  %4522 = vmatpush3.msra.mxu0 %v6313_v15 }
 0x11e   : > { %4548 = vmatprep.subr.mxu1 %v7314_v2  ;;  %4523 = vmatprep.subr.mxu0 %v7314_v2 }
 0x11f   : > { %4549 = vmatpush3.msk.msra.mxu1 %vm5616_vm13, %v7298_v22  ;;  %4524 = vmatpush3.msra.mxu0 %v6326_v51 }
 0x120   : > { %4525 = vmatprep.mubr.msk.f32.mxu0 %vm7392_vm1, %v7314_v2  ;;  %4550 = vmatprep.subr.mxu1 %v7314_v2 }
 0x121   : > { %4526 = vmatmul.mubr.f32.vlgmr.msra.gmra.mxu0 %v5594_v63  ;;  %4551 = vmatpush3.msk.msra.mxu1 %vm5644_vm15, %v7298_v22 }
 0x122   : > { %4552 = vmatprep.subr.mxu1 %v7314_v2  ;;  %4560 = vmatprep.mubr.msk.f32.mxu1 %vm7392_vm1, %v7314_v2 }
 0x123   : > { %4553 = vmatpush3.msk.msra.mxu1 %vm7435_vm3, %v7298_v22  ;;  %4563 = vmatprep.subr.mxu0 %v7314_v2 }
 0x124   : > { %4554 = vmatprep.subr.mxu1 %v7314_v2  ;;  %4564 = vmatpush3.xpose.msk.msra.mxu0 %vm5409_vm2, %v7298_v22 }
 0x125   : > { %4555 = vmatpush3.msk.msra.mxu1 %vm7439_vm9, %v7298_v22  ;;  %4565 = vmatprep.subr.mxu0 %v7314_v2 }
 0x126   : > { %4556 = vmatprep.subr.mxu1 %v7314_v2  ;;  %4595 = vmatprep.mubr.msk.f32.mxu0 %vm7392_vm1, %v7314_v2 }
 0x127   : > { %4557 = vmatpush3.msk.msra.mxu1 %vm5724_vm5, %v7298_v22 }
 0x128   : > { %4558 = vmatprep.subr.mxu1 %v7314_v2  ;;  %4566 = vmatpush3.xpose.msk.msra.mxu0 %vm5417_vm4, %v7298_v22  ;;  %vm7460_vm4 = vnez %v7350_v24 }
 0x129   : > { %4559 = vmatpush3.msk.msra.mxu1 %vm6245_vm7, %v7298_v22  ;;  %4567 = vmatprep.subr.mxu0 %v7314_v2 }
 0x12a   : > { %4561 = vmatmul.mubr.f32.vlgmr.msra.gmra.mxu1 %v5594_v63  ;;  %4598 = vmatprep.subr.mxu1 %v7314_v2 }
 0x12b   : > { %4599 = vmatpush3.xpose.msra.mxu1 %v6129_v44  ;;  %4630 = vmatprep.mubr.msk.f32.mxu1 %vm7392_vm1, %v7314_v2 }
 0x12c   : > { %4600 = vmatprep.subr.mxu1 %v7314_v2  ;;  %4568 = vmatpush3.xpose.msk.msra.mxu0 %vm7460_vm4, %v7298_v22 }
 0x12d   : > { %4569 = vmatprep.subr.mxu0 %v7314_v2 }
 0x12f   : > { %4601 = vmatpush3.xpose.msra.mxu1 %v6146_v12 }
 0x130   : > { %4602 = vmatprep.subr.mxu1 %v7314_v2  ;;  %4570 = vmatpush3.xpose.msk.msra.mxu0 %vm5452_vm8, %v7298_v22 }
 0x131   : > { %4571 = vmatprep.subr.mxu0 %v7314_v2 }
 0x133   : > { %4603 = vmatpush3.xpose.msra.mxu1 %v6167_v25 }
 0x134   : > { %4604 = vmatprep.subr.mxu1 %v7314_v2  ;;  %4572 = vmatpush3.xpose.msk.msra.mxu0 %vm5466_vm10, %v7298_v22 }
 0x135   : > { %4573 = vmatprep.subr.mxu0 %v7314_v2 }
 0x137   : > { %v430_v63 = vpop.f32.mrf.mxu0  ;;  %4605 = vmatpush3.xpose.msra.mxu1 %v7461_v58 }
 0x138   : > { %4606 = vmatprep.subr.mxu1 %v7314_v2  ;;  %4574 = vmatpush3.xpose.msk.msra.mxu0 %vm7459_vm6, %v7298_v22 }
 0x139   : > { %v4177_v61 = vpop.f32.mrf.mxu0  ;;  %4575 = vmatprep.subr.mxu0 %v7314_v2 }
 0x13b   : > { %4607 = vmatpush3.xpose.msra.mxu1 %v7462_v23  ;;  %v7464_v23 = vld [vmem:[#allocation24_spill] sm:$0xff] }
 0x13c   : > { %4608 = vmatprep.subr.mxu1 %v7314_v2  ;;  %4576 = vmatpush3.xpose.msk.msra.mxu0 %vm5510_vm14, %v7298_v22 }
 0x13d   : > { %4577 = vmatprep.subr.mxu0 %v7314_v2 }
 0x13f   : > { %4609 = vmatpush3.xpose.msra.mxu1 %v7463_v39  ;;  %v7465_v39 = vld [vmem:[#allocation14_spill] sm:$0xff] }
 0x140   : > { %4610 = vmatprep.subr.mxu1 %v7314_v2  ;;  %4578 = vmatpush3.xpose.msk.msra.mxu0 %vm5541_vm0, %v7298_v22 }
 0x141   : > { %4579 = vmatprep.subr.mxu0 %v7314_v2 }
 0x142   : > { %v581_v1 = vpop.f32.mrf.mxu1 }
 0x143   : > { %v582_v61 = vadd.f32 %v581_v1, %v430_v63  ;;  %4611 = vmatpush3.xpose.msra.mxu1 %v7464_v23  ;;  %v7466_v63 = vld [vmem:[#allocation27_spill] sm:$0xff] }
 0x144   : > { %v4212_v58 = vpop.f32.mrf.mxu1  ;;  %4612 = vmatprep.subr.mxu1 %v7314_v2  ;;  %4580 = vmatpush3.xpose.msk.msra.mxu0 %vm7458_vm12, %v7298_v22  ;;  %v7468_v1 = vld [vmem:[#allocation31_spill] sm:$0xff] }
 0x145   : > { %4581 = vmatprep.subr.mxu0 %v7314_v2  ;;  %v7467_v58 = vld [vmem:[#allocation29_spill] sm:$0xff] }
 0x147   : > { %4613 = vmatpush3.xpose.msra.mxu1 %v7465_v39 }
 0x148   : > { %4614 = vmatprep.subr.mxu1 %v7314_v2  ;;  %4582 = vmatpush3.xpose.msk.msra.mxu0 %vm5590_vm11, %v7298_v22 }
 0x149   : > { %4583 = vmatprep.subr.mxu0 %v7314_v2 }
 0x14b   : > { %4615 = vmatpush3.xpose.msra.mxu1 %v7466_v63 }
 0x14c   : > { %4616 = vmatprep.subr.mxu1 %v7314_v2  ;;  %4584 = vmatpush3.xpose.msk.msra.mxu0 %vm5616_vm13, %v7298_v22 }
 0x14d   : > { %4585 = vmatprep.subr.mxu0 %v7314_v2 }
 0x14f   : > { %4617 = vmatpush3.xpose.msra.mxu1 %v7467_v58 }
 0x150   : > { %4618 = vmatprep.subr.mxu1 %v7314_v2  ;;  %4586 = vmatpush3.xpose.msk.msra.mxu0 %vm5644_vm15, %v7298_v22 }
 0x151   : > { %4587 = vmatprep.subr.mxu0 %v7314_v2 }
 0x153   : > { %4619 = vmatpush3.xpose.msra.mxu1 %v7468_v1 }
 0x154   : > { %4620 = vmatprep.subr.mxu1 %v7314_v2  ;;  %4588 = vmatpush3.xpose.msk.msra.mxu0 %vm7435_vm3, %v7298_v22 }
 0x155   : > { %4589 = vmatprep.subr.mxu0 %v7314_v2 }
 0x157   : > { %4621 = vmatpush3.xpose.msra.mxu1 %v6321_v14 }
 0x158   : > { %4622 = vmatprep.subr.mxu1 %v7314_v2  ;;  %4590 = vmatpush3.xpose.msk.msra.mxu0 %vm7439_vm9, %v7298_v22 }
 0x159   : > { %v685_v58 = vpop.f32.mrf.mxu0  ;;  %4591 = vmatprep.subr.mxu0 %v7314_v2 }
 0x15a   : > { %v686_v1 = vadd.f32 %v685_v58, %v582_v61 }
 0x15b   : > { %v4247_v63 = vpop.f32.mrf.mxu0  ;;  %4623 = vmatpush3.xpose.msra.mxu1 %v6334_v6 }
 0x15c   : > { %4624 = vmatprep.subr.mxu1 %v7314_v2  ;;  %4592 = vmatpush3.xpose.msk.msra.mxu0 %vm5724_vm5, %v7298_v22 }
 0x15d   : > { %4593 = vmatprep.subr.mxu0 %v7314_v2 }
 0x15f   : > { %4625 = vmatpush3.xpose.msra.mxu1 %v6343_v5 }
 0x160   : > { %4626 = vmatprep.subr.mxu1 %v7314_v2  ;;  %4594 = vmatpush3.xpose.msk.msra.mxu0 %vm6245_vm7, %v7298_v22  ;;  %vm1625_vm7 = vcmp.eq.s32.totalorder %v7469_v7, 7 }
 0x161   : > { %4633 = vmatprep.subr.mxu0 %v7314_v2 }
 0x163   : > { %v774_v61 = vpop.f32.mrf.mxu1  ;;  %4627 = vmatpush3.xpose.msra.mxu1 %v6351_v13 }
 0x164   : > { %v775_v63 = vadd.f32 %v774_v61, %v686_v1  ;;  %4628 = vmatprep.subr.mxu1 %v7314_v2 }
 0x165   : > { %v4282_v58 = vpop.f32.mrf.mxu1 }
 0x167   : > { %4629 = vmatpush3.xpose.msra.mxu1 %v6357_v56 }
 0x168   : > { %4668 = vmatprep.subr.mxu1 %v7314_v2 }
 0x17b   : > { %v893_v5 = vpop.f32.mrf.mxu0 }
 0x17c   : > { %v894_v6 = vadd.f32 %v893_v5, %v775_v63 }
 0x17d   : > { %v4317_v14 = vpop.f32.mrf.mxu0 }
 0x185   : > { %v980_v39 = vpop.f32.mrf.mxu1 }
 0x186   : > { %v981_v23 = vadd.f32 %v980_v39, %v894_v6  ;;  %v7470_v6 = vmov 1.0  }
 0x187   : > { %v4352_v25 = vpop.f32.mrf.mxu1 }
 0x188   : > { %v1626_v25 = vsel %vm1625_vm7, -1.0, %v7470_v6 }
 0x19e   : > { %v1071_v22 = vpop.f32.mrf.mxu0 }
 0x1a0   : > { %v4387_v12 = vpop.f32.mrf.mxu0 }
 0x1a7   : > { %v1222_v51 = vpop.f32.mrf.mxu1 }
 0x1a8   : > { %v1223_v58 = vadd.f32 %v1222_v51, %v1071_v22 }
 0x1a9   : > { %v4422_v44 = vpop.f32.mrf.mxu1 }
 0x1bf   : > { %v1326_v15 = vpop.f32.mrf.mxu0 }
 0x1c0   : > { %v1327_v56 = vadd.f32 %v1326_v15, %v1223_v58 }
 0x1c1   : > { %v4457_v13 = vpop.f32.mrf.mxu0 }
 0x1c9   : > { %v1415_v1 = vpop.f32.mrf.mxu1 }
 0x1ca   : > { %v1416_v8 = vadd.f32 %v1415_v1, %v1327_v56 }
 0x1cb   : > { %v4492_v61 = vpop.f32.mrf.mxu1 }
 0x1e1   : > { %v1534_v41 = vpop.f32.mrf.mxu0 }
 0x1e2   : > { %v1535_v2 = vadd.f32 %v1534_v41, %v1416_v8 }
 0x1e3   : > { %v4527_v53 = vpop.f32.mrf.mxu0 }
 0x1ea   : > { %v1621_v5 = vpop.f32.mrf.mxu1 }
 0x1eb   : > { %v1622_v14 = vadd.f32 %v1621_v5, %v1535_v2 }
 0x1ec   : > { %v4562_v39 = vpop.f32.mrf.mxu1 }
 0x1ed   : > { %v1627_v12 = vmul.f32 %v1622_v14, %v981_v23 }
 0x1ef   : > { %v1628_v63 = vmul.f32 %v1627_v12, %v1626_v25  ;;  %v7475_v12 = vld [vmem:[#allocation19_spill] sm:$0xff] }
 0x1f1   : > { %v1629_v44 = vrot.slane %v1628_v63, 4 }
 0x1f3   : > { %v1630_v32 = vadd.f32 %v1629_v44, %v1628_v63  ;;  %v7476_v63 = vld [vmem:[#allocation21_spill] sm:$0xff]  ;;  %v7477_v44 = vld [vmem:[#allocation23_spill] sm:$0xff] }
 0x1f5   : > { %v1631_v13 = vrot.slane %v1630_v32, 2 }
 0x1f7   : > { %v1632_v45 = vadd.f32 %v1631_v13, %v1630_v32  ;;  %v7478_v13 = vld [vmem:[#allocation25_spill] sm:$0xff] }
 0x1f9   : > { %v1633_v61 = vrot.slane %v1632_v45, 1 }
 0x1fb   : > { %v1634_v9 = vadd.f32 %v1633_v61, %v1632_v45  ;;  %v7471_v45 = vmov 0.0   ;;  %v7480_v61 = vld [vmem:[#allocation26_spill] sm:$0xff] }
 0x1fd   : > { %v1635_v22 = vsub.f32 0.0, %v1634_v9 }
 0x1ff   : > { %v1636_v51 = vmax.f32 %v1635_v22, 1.0  ;;  %v7481_v22 = vld [vmem:[#allocation28_spill] sm:$0xff] }
 0x201   : > { %v1637_v15 = vmul.f32 %v1636_v51, %v1636_v51 }
 0x203   : > { %v3621_v53 = vadd.f32 -1.0, %v1637_v15  ;;  %v7483_v15 = vld [vmem:[#allocation32_spill] sm:$0xff] }
 0x205   : > { %v1639_v41 = vmax.f32 %v3621_v53, 0.0  ;;  %v7484_v53 = vld [vmem:[#allocation15_spill] sm:$0xff] }
 0x207   : > { %5077 = vrsqrt.f32 %v1639_v41  ;;  %vm1642_vm5 = vcmp.eq.f32.partialorder %v1639_v41, inf  ;;  %v1645_v2 = vand.u32 2147483648, %v1639_v41  ;;  %vm1644_vm7 = vcmp.eq.f32.partialorder %v1639_v41, 0.0 }
 0x214   : > { %v5078_v7 = vpop.eup %5077 }
 0x215   : > { %v1641_v8 = vmul.f32 %v5078_v7, %v1639_v41  ;;  %v7486_v7 = vld [vmem:[#allocation16_spill] sm:$0xff] }
 0x217   : > { %v1643_v56 = vsel %vm1642_vm5, %v1639_v41, %v1641_v8  ;;  %vm7472_vm5 = vnez %v7348_v21  ;;  %v7485_v41 = vld [vmem:[#allocation34_spill] sm:$0xff]  ;;  %v7487_v8 = vld [vmem:[#allocation17_spill] sm:$0xff] }
 0x218   : > { %v1646_v1 = vsel %vm1644_vm7, %v1645_v2, %v1643_v56  ;;  %vm7473_vm7 = vnez %v7443_v36  ;;  %v7488_v2 = vld [vmem:[#allocation18_spill] sm:$0xff]  ;;  %v7489_v56 = vld [vmem:[#allocation20_spill] sm:$0xff] }
 0x219   : > { %v1647_v58 = vadd.f32 %v1646_v1, %v1636_v51  ;;  %v7482_v51 = vld [vmem:[#allocation30_spill] sm:$0xff] }
 0x21a   : > { %v7490_v1 = vld [vmem:[#allocation22_spill] sm:$0xff] }
 0x21b   : > { %5079 = vrcp.f32 %v1647_v58  ;;  %v7491_v58 = vld [vmem:[#allocation24_spill] sm:$0xff] }
 0x228   : > { %v5080_v5 = vpop.eup %5079 }
 0x229   : > { %v1650_v14 = vmul.f32 %v5080_v5, %v981_v23  ;;  %v7492_v5 = vld [vmem:[#allocation14_spill] sm:$0xff] }
 0x22b   : > { %v6670_v32 = vand.u32 4294901760, %v1650_v14 }
 0x22d   : > { %v6673_v9 = vsub.f32 %v1650_v14, %v6670_v32  ;;  %4631 = vmatmul.mubr.f32.vlgmr.msra.gmra.mxu1 %v6670_v32  ;;  %v7493_v14 = vld [vmem:[#allocation27_spill] sm:$0xff] }
 0x22e   : > { %4669 = vmatpush3.xpose.msk.msra.mxu1 %vm5409_vm2, %v7470_v6  ;;  %4700 = vmatprep.mubr.msk.f32.mxu1 %vm7392_vm1, %v7471_v45 }
 0x22f   : > { %4670 = vmatprep.subr.mxu1 %v7471_v45  ;;  %v1735_v25 = vand.u32 4294901760, %v6673_v9 }
 0x231   : > { %v1736_v23 = vsub.f32 %v6673_v9, %v1735_v25 }
 0x232   : > { %4671 = vmatpush3.xpose.msk.msra.mxu1 %vm7472_vm5, %v7470_v6 }
 0x233   : > { %4672 = vmatprep.subr.mxu1 %v7471_v45  ;;  %v1737_v39 = vand.u32 4294901760, %v1736_v23  ;;  %v7498_v23 = vld [vmem:[#allocation35_spill] sm:$0xff] }
 0x235   : > { %4596 = vmatmul.mubr.f32.vlgmr.msra.gmra.mxu0 %v1737_v39  ;;  %v7499_v39 = vld [vmem:[#allocation36_spill] sm:$0xff] }
 0x236   : > { %4634 = vmatpush3.xpose.msra.mxu0 %v6029_v17  ;;  %4673 = vmatpush3.xpose.msk.msra.mxu1 %vm7460_vm4, %v7470_v6 }
 0x237   : > { %4635 = vmatprep.subr.mxu0 %v7471_v45  ;;  %4674 = vmatprep.subr.mxu1 %v7471_v45 }
 0x238   : > { %4665 = vmatprep.mubr.msk.f32.mxu0 %vm7392_vm1, %v7471_v45 }
 0x23a   : > { %4636 = vmatpush3.xpose.msra.mxu0 %v6042_v18  ;;  %4675 = vmatpush3.xpose.msk.msra.mxu1 %vm5452_vm8, %v7470_v6 }
 0x23b   : > { %4637 = vmatprep.subr.mxu0 %v7471_v45  ;;  %4676 = vmatprep.subr.mxu1 %v7471_v45 }
 0x23e   : > { %4638 = vmatpush3.xpose.msra.mxu0 %v6058_v54  ;;  %4677 = vmatpush3.xpose.msk.msra.mxu1 %vm5466_vm10, %v7470_v6 }
 0x23f   : > { %4639 = vmatprep.subr.mxu0 %v7471_v45  ;;  %4678 = vmatprep.subr.mxu1 %v7471_v45 }
 0x242   : > { %4640 = vmatpush3.xpose.msra.mxu0 %v6075_v0  ;;  %4679 = vmatpush3.xpose.msk.msra.mxu1 %vm7459_vm6, %v7470_v6 }
 0x243   : > { %4641 = vmatprep.subr.mxu0 %v7471_v45  ;;  %4680 = vmatprep.subr.mxu1 %v7471_v45 }
 0x246   : > { %4642 = vmatpush3.xpose.msra.mxu0 %v6094_v50  ;;  %4681 = vmatpush3.xpose.msk.msra.mxu1 %vm5510_vm14, %v7470_v6 }
 0x247   : > { %4643 = vmatprep.subr.mxu0 %v7471_v45  ;;  %4682 = vmatprep.subr.mxu1 %v7471_v45 }
 0x24a   : > { %4644 = vmatpush3.xpose.msra.mxu0 %v6113_v43  ;;  %4683 = vmatpush3.xpose.msk.msra.mxu1 %vm5541_vm0, %v7470_v6 }
 0x24b   : > { %4645 = vmatprep.subr.mxu0 %v7471_v45  ;;  %4684 = vmatprep.subr.mxu1 %v7471_v45 }
 0x24e   : > { %4646 = vmatpush3.xpose.msra.mxu0 %v6117_v38  ;;  %4685 = vmatpush3.xpose.msk.msra.mxu1 %vm7458_vm12, %v7470_v6 }
 0x24f   : > { %4647 = vmatprep.subr.mxu0 %v7471_v45  ;;  %4686 = vmatprep.subr.mxu1 %v7471_v45 }
 0x252   : > { %4648 = vmatpush3.xpose.msra.mxu0 %v6153_v42  ;;  %4687 = vmatpush3.xpose.msk.msra.mxu1 %vm5590_vm11, %v7470_v6 }
 0x253   : > { %4649 = vmatprep.subr.mxu0 %v7471_v45  ;;  %4688 = vmatprep.subr.mxu1 %v7471_v45 }
 0x256   : > { %4650 = vmatpush3.xpose.msra.mxu0 %v6171_v35  ;;  %4689 = vmatpush3.xpose.msk.msra.mxu1 %vm5616_vm13, %v7470_v6 }
 0x257   : > { %4651 = vmatprep.subr.mxu0 %v7471_v45  ;;  %4690 = vmatprep.subr.mxu1 %v7471_v45 }
 0x25a   : > { %4652 = vmatpush3.xpose.msra.mxu0 %v6189_v10  ;;  %4691 = vmatpush3.xpose.msk.msra.mxu1 %vm5644_vm15, %v7470_v6 }
 0x25b   : > { %4653 = vmatprep.subr.mxu0 %v7471_v45  ;;  %4692 = vmatprep.subr.mxu1 %v7471_v45 }
 0x25e   : > { %4654 = vmatpush3.xpose.msra.mxu0 %v6207_v16  ;;  %4693 = vmatpush3.xpose.msk.msra.mxu1 %vm7435_vm3, %v7470_v6  ;;  %vm7474_vm3 = vnez %v7442_v4 }
 0x25f   : > { %4655 = vmatprep.subr.mxu0 %v7471_v45  ;;  %4694 = vmatprep.subr.mxu1 %v7471_v45 }
 0x262   : > { %4656 = vmatpush3.xpose.msra.mxu0 %v6225_v37  ;;  %4695 = vmatpush3.xpose.msk.msra.mxu1 %vm7439_vm9, %v7470_v6 }
 0x263   : > { %4657 = vmatprep.subr.mxu0 %v7471_v45  ;;  %4696 = vmatprep.subr.mxu1 %v7471_v45 }
 0x266   : > { %4658 = vmatpush3.xpose.msra.mxu0 %v6249_v57  ;;  %4697 = vmatpush3.xpose.msk.msra.mxu1 %vm7473_vm7, %v7470_v6 }
 0x267   : > { %4659 = vmatprep.subr.mxu0 %v7471_v45  ;;  %4698 = vmatprep.subr.mxu1 %v7471_v45 }
 0x26a   : > { %4660 = vmatpush3.xpose.msra.mxu0 %v6267_v11  ;;  %4699 = vmatpush3.xpose.msk.msra.mxu1 %vm7474_vm3, %v7470_v6 }
 0x26b   : > { %4661 = vmatprep.subr.mxu0 %v7471_v45  ;;  %4738 = vmatprep.subr.mxu1 %v7471_v45 }
 0x26d   : > { %4701 = vmatmul.mubr.f32.vlgmr.msra.gmra.mxu1 %v1735_v25  ;;  %v7497_v25 = vld [vmem:[#allocation33_spill] sm:$0xff] }
 0x26e   : > { %4662 = vmatpush3.xpose.msra.mxu0 %v6285_v3  ;;  %4739 = vmatpush3.xpose.msk.msra.mxu1 %vm5409_vm2, %v7470_v6 }
 0x26f   : > { %4663 = vmatprep.subr.mxu0 %v7471_v45  ;;  %4740 = vmatprep.subr.mxu1 %v7471_v45 }
 0x270   : > { %4770 = vmatprep.mubr.msk.f32.mxu1 %vm7392_vm1, %v7471_v45 }
 0x272   : > { %4664 = vmatpush3.xpose.msra.mxu0 %v6300_v29  ;;  %4741 = vmatpush3.xpose.msk.msra.mxu1 %vm7472_vm5, %v7470_v6 }
 0x273   : > { %4703 = vmatprep.subr.mxu0 %v7471_v45  ;;  %4742 = vmatprep.subr.mxu1 %v7471_v45 }
 0x275   : > { %4666 = vmatmul.mubr.f32.vlgmr.msra.gmra.mxu0 %v6673_v9  ;;  %v7495_v9 = vld [vmem:[#allocation31_spill] sm:$0xff] }
 0x276   : > { %4704 = vmatpush3.xpose.msra.mxu0 %v6056_v19  ;;  %4743 = vmatpush3.xpose.msk.msra.mxu1 %vm7460_vm4, %v7470_v6 }
 0x277   : > { %4705 = vmatprep.subr.mxu0 %v7471_v45  ;;  %4744 = vmatprep.subr.mxu1 %v7471_v45 }
 0x278   : > { %4735 = vmatprep.mubr.msk.f32.mxu0 %vm7392_vm1, %v7471_v45 }
 0x27a   : > { %4706 = vmatpush3.xpose.msra.mxu0 %v6073_v31  ;;  %4745 = vmatpush3.xpose.msk.msra.mxu1 %vm5452_vm8, %v7470_v6 }
 0x27b   : > { %4707 = vmatprep.subr.mxu0 %v7471_v45  ;;  %4746 = vmatprep.subr.mxu1 %v7471_v45 }
 0x27e   : > { %4708 = vmatpush3.xpose.msra.mxu0 %v6092_v47  ;;  %4747 = vmatpush3.xpose.msk.msra.mxu1 %vm5466_vm10, %v7470_v6 }
 0x27f   : > { %4709 = vmatprep.subr.mxu0 %v7471_v45  ;;  %4748 = vmatprep.subr.mxu1 %v7471_v45 }
 0x282   : > { %4710 = vmatpush3.xpose.msra.mxu0 %v6111_v59  ;;  %4749 = vmatpush3.xpose.msk.msra.mxu1 %vm7459_vm6, %v7470_v6 }
 0x283   : > { %4711 = vmatprep.subr.mxu0 %v7471_v45  ;;  %4750 = vmatprep.subr.mxu1 %v7471_v45 }
 0x286   : > { %4712 = vmatpush3.xpose.msra.mxu0 %v6134_v27  ;;  %4751 = vmatpush3.xpose.msk.msra.mxu1 %vm5510_vm14, %v7470_v6 }
 0x287   : > { %4713 = vmatprep.subr.mxu0 %v7471_v45  ;;  %4752 = vmatprep.subr.mxu1 %v7471_v45 }
 0x28a   : > { %4714 = vmatpush3.xpose.msra.mxu0 %v6151_v49  ;;  %4753 = vmatpush3.xpose.msk.msra.mxu1 %vm5541_vm0, %v7470_v6 }
 0x28b   : > { %4715 = vmatprep.subr.mxu0 %v7471_v45  ;;  %4754 = vmatprep.subr.mxu1 %v7471_v45 }
 0x28e   : > { %4716 = vmatpush3.xpose.msra.mxu0 %v6158_v52  ;;  %4755 = vmatpush3.xpose.msk.msra.mxu1 %vm7458_vm12, %v7470_v6 }
 0x28f   : > { %4717 = vmatprep.subr.mxu0 %v7471_v45  ;;  %4756 = vmatprep.subr.mxu1 %v7471_v45 }
 0x292   : > { %4718 = vmatpush3.xpose.msra.mxu0 %v7475_v12  ;;  %4757 = vmatpush3.xpose.msk.msra.mxu1 %vm5590_vm11, %v7470_v6  ;;  %vm7479_vm11 = vnez %v7370_v60 }
 0x293   : > { %4719 = vmatprep.subr.mxu0 %v7471_v45  ;;  %4758 = vmatprep.subr.mxu1 %v7471_v45 }
 0x296   : > { %4720 = vmatpush3.xpose.msra.mxu0 %v7476_v63  ;;  %4759 = vmatpush3.xpose.msk.msra.mxu1 %vm5616_vm13, %v7470_v6 }
 0x297   : > { %4721 = vmatprep.subr.mxu0 %v7471_v45  ;;  %4760 = vmatprep.subr.mxu1 %v7471_v45 }
 0x29a   : > { %4722 = vmatpush3.xpose.msra.mxu0 %v7477_v44  ;;  %4761 = vmatpush3.xpose.msk.msra.mxu1 %vm5644_vm15, %v7470_v6 }
 0x29b   : > { %4723 = vmatprep.subr.mxu0 %v7471_v45  ;;  %4762 = vmatprep.subr.mxu1 %v7471_v45 }
 0x29e   : > { %4724 = vmatpush3.xpose.msra.mxu0 %v7478_v13  ;;  %4763 = vmatpush3.xpose.msk.msra.mxu1 %vm7479_vm11, %v7470_v6 }
 0x29f   : > { %4725 = vmatprep.subr.mxu0 %v7471_v45  ;;  %4764 = vmatprep.subr.mxu1 %v7471_v45 }
 0x2a2   : > { %4726 = vmatpush3.xpose.msra.mxu0 %v7480_v61  ;;  %4765 = vmatpush3.xpose.msk.msra.mxu1 %vm7439_vm9, %v7470_v6 }
 0x2a3   : > { %4727 = vmatprep.subr.mxu0 %v7471_v45  ;;  %4766 = vmatprep.subr.mxu1 %v7471_v45 }
 0x2a6   : > { %4728 = vmatpush3.xpose.msra.mxu0 %v7481_v22  ;;  %4767 = vmatpush3.xpose.msk.msra.mxu1 %vm7473_vm7, %v7470_v6 }
 0x2a7   : > { %4729 = vmatprep.subr.mxu0 %v7471_v45  ;;  %4768 = vmatprep.subr.mxu1 %v7471_v45 }
 0x2aa   : > { %4730 = vmatpush3.xpose.msra.mxu0 %v7482_v51  ;;  %4769 = vmatpush3.xpose.msk.msra.mxu1 %vm7474_vm3, %v7470_v6 }
 0x2ab   : > { %4731 = vmatprep.subr.mxu0 %v7471_v45  ;;  %4808 = vmatprep.subr.mxu1 %v7471_v45 }
 0x2ad   : > { %4771 = vmatmul.mubr.f32.vlgmr.msra.gmra.mxu1 %v6670_v32 }
 0x2ae   : > { %4732 = vmatpush3.xpose.msra.mxu0 %v7483_v15  ;;  %4809 = vmatpush3.xpose.msra.mxu1 %v7484_v53  ;;  %v7500_v53 = vld [vmem:[#allocation37_spill] sm:$0xff] }
 0x2af   : > { %4733 = vmatprep.subr.mxu0 %v7471_v45  ;;  %4810 = vmatprep.subr.mxu1 %v7471_v45 }
 0x2b0   : > { %4840 = vmatprep.mubr.msk.f32.mxu1 %vm7392_vm1, %v7471_v45 }
 0x2b2   : > { %4734 = vmatpush3.xpose.msra.mxu0 %v7485_v41  ;;  %4811 = vmatpush3.xpose.msra.mxu1 %v7486_v7  ;;  %v7501_v7 = vld [vmem:[#allocation38_spill] sm:$0xff] }
 0x2b3   : > { %4773 = vmatprep.subr.mxu0 %v7471_v45  ;;  %4812 = vmatprep.subr.mxu1 %v7471_v45 }
 0x2b5   : > { %4736 = vmatmul.mubr.f32.vlgmr.msra.gmra.mxu0 %v6670_v32  ;;  %v7494_v32 = vld [vmem:[#allocation29_spill] sm:$0xff] }
 0x2b6   : > { %4774 = vmatpush3.xpose.msk.msra.mxu0 %vm5409_vm2, %v7470_v6  ;;  %4813 = vmatpush3.xpose.msra.mxu1 %v7487_v8 }
 0x2b7   : > { %4775 = vmatprep.subr.mxu0 %v7471_v45  ;;  %4814 = vmatprep.subr.mxu1 %v7471_v45 }
 0x2b8   : > { %4805 = vmatprep.mubr.msk.f32.mxu0 %vm7392_vm1, %v7471_v45 }
 0x2ba   : > { %4776 = vmatpush3.xpose.msk.msra.mxu0 %vm7472_vm5, %v7470_v6  ;;  %4815 = vmatpush3.xpose.msra.mxu1 %v7488_v2 }
 0x2bb   : > { %4777 = vmatprep.subr.mxu0 %v7471_v45  ;;  %4816 = vmatprep.subr.mxu1 %v7471_v45 }
 0x2be   : > { %4778 = vmatpush3.xpose.msk.msra.mxu0 %vm7460_vm4, %v7470_v6  ;;  %4817 = vmatpush3.xpose.msra.mxu1 %v7489_v56 }
 0x2bf   : > { %4779 = vmatprep.subr.mxu0 %v7471_v45  ;;  %4818 = vmatprep.subr.mxu1 %v7471_v45 }
 0x2c2   : > { %4780 = vmatpush3.xpose.msk.msra.mxu0 %vm5452_vm8, %v7470_v6  ;;  %4819 = vmatpush3.xpose.msra.mxu1 %v7490_v1 }
 0x2c3   : > { %4781 = vmatprep.subr.mxu0 %v7471_v45  ;;  %4820 = vmatprep.subr.mxu1 %v7471_v45 }
 0x2c6   : > { %4782 = vmatpush3.xpose.msk.msra.mxu0 %vm5466_vm10, %v7470_v6  ;;  %4821 = vmatpush3.xpose.msra.mxu1 %v7491_v58 }
 0x2c7   : > { %4783 = vmatprep.subr.mxu0 %v7471_v45  ;;  %4822 = vmatprep.subr.mxu1 %v7471_v45 }
 0x2ca   : > { %4784 = vmatpush3.xpose.msk.msra.mxu0 %vm7459_vm6, %v7470_v6  ;;  %4823 = vmatpush3.xpose.msra.mxu1 %v7492_v5 }
 0x2cb   : > { %4785 = vmatprep.subr.mxu0 %v7471_v45  ;;  %4824 = vmatprep.subr.mxu1 %v7471_v45 }
 0x2ce   : > { %4786 = vmatpush3.xpose.msk.msra.mxu0 %vm5510_vm14, %v7470_v6  ;;  %4825 = vmatpush3.xpose.msra.mxu1 %v7493_v14  ;;  %vm7496_vm14 = vnez %v7364_v62 }
 0x2cf   : > { %4787 = vmatprep.subr.mxu0 %v7471_v45  ;;  %4826 = vmatprep.subr.mxu1 %v7471_v45 }
 0x2d2   : > { %4788 = vmatpush3.xpose.msk.msra.mxu0 %vm5541_vm0, %v7470_v6  ;;  %4827 = vmatpush3.xpose.msra.mxu1 %v7494_v32 }
 0x2d3   : > { %4789 = vmatprep.subr.mxu0 %v7471_v45  ;;  %4828 = vmatprep.subr.mxu1 %v7471_v45 }
 0x2d6   : > { %4790 = vmatpush3.xpose.msk.msra.mxu0 %vm7458_vm12, %v7470_v6  ;;  %4829 = vmatpush3.xpose.msra.mxu1 %v7495_v9 }
 0x2d7   : > { %4791 = vmatprep.subr.mxu0 %v7471_v45  ;;  %4830 = vmatprep.subr.mxu1 %v7471_v45 }
 0x2da   : > { %4792 = vmatpush3.xpose.msk.msra.mxu0 %vm7496_vm14, %v7470_v6  ;;  %4831 = vmatpush3.xpose.msra.mxu1 %v7497_v25 }
 0x2db   : > { %4793 = vmatprep.subr.mxu0 %v7471_v45  ;;  %4832 = vmatprep.subr.mxu1 %v7471_v45 }
 0x2de   : > { %4794 = vmatpush3.xpose.msk.msra.mxu0 %vm5616_vm13, %v7470_v6  ;;  %4833 = vmatpush3.xpose.msra.mxu1 %v7498_v23 }
 0x2df   : > { %4795 = vmatprep.subr.mxu0 %v7471_v45  ;;  %4834 = vmatprep.subr.mxu1 %v7471_v45 }
 0x2e2   : > { %4796 = vmatpush3.xpose.msk.msra.mxu0 %vm5644_vm15, %v7470_v6  ;;  %4835 = vmatpush3.xpose.msra.mxu1 %v7499_v39 }
 0x2e3   : > { %4797 = vmatprep.subr.mxu0 %v7471_v45  ;;  %4836 = vmatprep.subr.mxu1 %v7471_v45 }
 0x2e6   : > { %4798 = vmatpush3.xpose.msk.msra.mxu0 %vm7479_vm11, %v7470_v6  ;;  %4837 = vmatpush3.xpose.msra.mxu1 %v7500_v53 }
 0x2e7   : > { %4799 = vmatprep.subr.mxu0 %v7471_v45  ;;  %4838 = vmatprep.subr.mxu1 %v7471_v45 }
 0x2ea   : > { %4800 = vmatpush3.xpose.msk.msra.mxu0 %vm7439_vm9, %v7470_v6  ;;  %4839 = vmatpush3.xpose.msra.mxu1 %v7501_v7 }
 0x2eb   : > { %4801 = vmatprep.subr.mxu0 %v7471_v45  ;;  %4878 = vmatprep.subr.mxu1 %v7471_v45 }
 0x2ed   : > { %v1890_v8 = vpop.f32.mrf.mxu1  ;;  %4841 = vmatmul.mubr.f32.vlgmr.msra.gmra.mxu1 %v7470_v6 }
 0x2ee   : > { %4802 = vmatpush3.xpose.msk.msra.mxu0 %vm7473_vm7, %v7470_v6  ;;  %4879 = vmatpush3.xpose.msk.msra.mxu1 %vm5409_vm2, %v7470_v6 }
 0x2ef   : > { %v4632_v2 = vpop.f32.mrf.mxu1  ;;  %4803 = vmatprep.subr.mxu0 %v7471_v45  ;;  %4880 = vmatprep.subr.mxu1 %v7471_v45 }
 0x2f0   : > { %4910 = vmatprep.mubr.msk.f32.mxu1 %vm7392_vm1, %v7471_v45 }
 0x2f2   : > { %4804 = vmatpush3.xpose.msk.msra.mxu0 %vm7474_vm3, %v7470_v6  ;;  %4881 = vmatpush3.xpose.msk.msra.mxu1 %vm7472_vm5, %v7470_v6 }
 0x2f3   : > { %4843 = vmatprep.subr.mxu0 %v7471_v45  ;;  %4882 = vmatprep.subr.mxu1 %v7471_v45 }
 0x2f5   : > { %4806 = vmatmul.mubr.f32.vlgmr.msra.gmra.mxu0 %v7471_v45  ;;  %v1739_v56 = vpop.f32.mrf.mxu0 }
 0x2f6   : > { %v6993_v1 = vadd.f32 %v1890_v8, %v1739_v56  ;;  %4844 = vmatpush3.xpose.msra.mxu0 %v6029_v17  ;;  %4883 = vmatpush3.xpose.msk.msra.mxu1 %vm7460_vm4, %v7470_v6 }
 0x2f7   : > { %v4597_v58 = vpop.f32.mrf.mxu0  ;;  %4845 = vmatprep.subr.mxu0 %v7471_v45  ;;  %4884 = vmatprep.subr.mxu1 %v7471_v45 }
 0x2f8   : > { %4875 = vmatprep.mubr.msk.f32.mxu0 %vm7392_vm1, %v7471_v45 }
 0x2fa   : > { %4846 = vmatpush3.xpose.msra.mxu0 %v6042_v18  ;;  %4885 = vmatpush3.xpose.msk.msra.mxu1 %vm5452_vm8, %v7470_v6  ;;  %vm7502_vm8 = vnez %v7358_v40  ;;  %v1651_v40 = vld [vmem:[#allocation2] sm:$0xff] }
 0x2fb   : > { %4847 = vmatprep.subr.mxu0 %v7471_v45  ;;  %4886 = vmatprep.subr.mxu1 %v7471_v45 }
 0x2fe   : > { %4848 = vmatpush3.xpose.msra.mxu0 %v6058_v54  ;;  %4887 = vmatpush3.xpose.msk.msra.mxu1 %vm5466_vm10, %v7470_v6 }
 0x2ff   : > { %4849 = vmatprep.subr.mxu0 %v7471_v45  ;;  %4888 = vmatprep.subr.mxu1 %v7471_v45 }
 0x302   : > { %4850 = vmatpush3.xpose.msra.mxu0 %v6075_v0  ;;  %4889 = vmatpush3.xpose.msk.msra.mxu1 %vm7459_vm6, %v7470_v6 }
 0x303   : > { %4851 = vmatprep.subr.mxu0 %v7471_v45  ;;  %4890 = vmatprep.subr.mxu1 %v7471_v45 }
 0x306   : > { %4852 = vmatpush3.xpose.msra.mxu0 %v6094_v50  ;;  %4891 = vmatpush3.xpose.msk.msra.mxu1 %vm7502_vm8, %v7470_v6 }
 0x307   : > { %4853 = vmatprep.subr.mxu0 %v7471_v45  ;;  %4892 = vmatprep.subr.mxu1 %v7471_v45 }
 0x30a   : > { %4854 = vmatpush3.xpose.msra.mxu0 %v6113_v43  ;;  %4893 = vmatpush3.xpose.msk.msra.mxu1 %vm5541_vm0, %v7470_v6 }
 0x30b   : > { %4855 = vmatprep.subr.mxu0 %v7471_v45  ;;  %4894 = vmatprep.subr.mxu1 %v7471_v45 }
 0x30e   : > { %4856 = vmatpush3.xpose.msra.mxu0 %v6117_v38  ;;  %4895 = vmatpush3.xpose.msk.msra.mxu1 %vm7458_vm12, %v7470_v6 }
 0x30f   : > { %4857 = vmatprep.subr.mxu0 %v7471_v45  ;;  %4896 = vmatprep.subr.mxu1 %v7471_v45 }
 0x312   : > { %4858 = vmatpush3.xpose.msra.mxu0 %v6153_v42  ;;  %4897 = vmatpush3.xpose.msk.msra.mxu1 %vm7496_vm14, %v7470_v6 }
 0x313   : > { %4859 = vmatprep.subr.mxu0 %v7471_v45  ;;  %4898 = vmatprep.subr.mxu1 %v7471_v45 }
 0x316   : > { %4860 = vmatpush3.xpose.msra.mxu0 %v6171_v35  ;;  %4899 = vmatpush3.xpose.msk.msra.mxu1 %vm5616_vm13, %v7470_v6 }
 0x317   : > { %4861 = vmatprep.subr.mxu0 %v7471_v45  ;;  %4900 = vmatprep.subr.mxu1 %v7471_v45 }
 0x31a   : > { %4862 = vmatpush3.xpose.msra.mxu0 %v6189_v10  ;;  %4901 = vmatpush3.xpose.msk.msra.mxu1 %vm5644_vm15, %v7470_v6 }
 0x31b   : > { %4863 = vmatprep.subr.mxu0 %v7471_v45  ;;  %4902 = vmatprep.subr.mxu1 %v7471_v45 }
 0x31e   : > { %4864 = vmatpush3.xpose.msra.mxu0 %v6207_v16  ;;  %4903 = vmatpush3.xpose.msk.msra.mxu1 %vm7479_vm11, %v7470_v6 }
 0x31f   : > { %4865 = vmatprep.subr.mxu0 %v7471_v45  ;;  %4904 = vmatprep.subr.mxu1 %v7471_v45 }
 0x322   : > { %4866 = vmatpush3.xpose.msra.mxu0 %v6225_v37  ;;  %4905 = vmatpush3.xpose.msk.msra.mxu1 %vm7439_vm9, %v7470_v6 }
 0x323   : > { %4867 = vmatprep.subr.mxu0 %v7471_v45  ;;  %4906 = vmatprep.subr.mxu1 %v7471_v45 }
 0x326   : > { %4868 = vmatpush3.xpose.msra.mxu0 %v6249_v57  ;;  %4907 = vmatpush3.xpose.msk.msra.mxu1 %vm7473_vm7, %v7470_v6 }
 0x327   : > { %4869 = vmatprep.subr.mxu0 %v7471_v45  ;;  %4908 = vmatprep.subr.mxu1 %v7471_v45 }
 0x32a   : > { %4870 = vmatpush3.xpose.msra.mxu0 %v6267_v11  ;;  %4909 = vmatpush3.xpose.msk.msra.mxu1 %vm7474_vm3, %v7470_v6 }
 0x32b   : > { %4871 = vmatprep.subr.mxu0 %v7471_v45  ;;  %4948 = vmatprep.subr.mxu1 %v7471_v45 }
 0x32d   : > { %v2083_v17 = vpop.f32.mrf.mxu1  ;;  %4911 = vmatmul.mubr.f32.vlgmr.msra.gmra.mxu1 %v7471_v45 }
 0x32e   : > { %4872 = vmatpush3.xpose.msra.mxu0 %v6285_v3  ;;  %4949 = vmatpush3.xpose.msk.msra.mxu1 %vm5409_vm2, %v7470_v6  ;;  %vm7503_vm2 = vnez %v7352_v28 }
 0x32f   : > { %v4702_v18 = vpop.f32.mrf.mxu1  ;;  %4873 = vmatprep.subr.mxu0 %v7471_v45  ;;  %4950 = vmatprep.subr.mxu1 %v7471_v45 }
 0x330   : > { %4980 = vmatprep.mubr.msk.f32.mxu1 %vm7392_vm1, %v7471_v45 }
 0x332   : > { %4874 = vmatpush3.xpose.msra.mxu0 %v6300_v29  ;;  %4951 = vmatpush3.xpose.msk.msra.mxu1 %vm7472_vm5, %v7470_v6 }
 0x333   : > { %4913 = vmatprep.subr.mxu0 %v7471_v45  ;;  %4952 = vmatprep.subr.mxu1 %v7471_v45 }
 0x335   : > { %v1994_v3 = vpop.f32.mrf.mxu0  ;;  %4876 = vmatmul.mubr.f32.vlgmr.msra.gmra.mxu0 %v7471_v45 }
 0x336   : > { %v1995_v20 = vadd.f32 %v1994_v3, %v6993_v1  ;;  %4914 = vmatpush3.xpose.msra.mxu0 %v6056_v19  ;;  %4953 = vmatpush3.xpose.msk.msra.mxu1 %vm7460_vm4, %v7470_v6 }
 0x337   : > { %v4667_v54 = vpop.f32.mrf.mxu0  ;;  %4915 = vmatprep.subr.mxu0 %v7471_v45  ;;  %4954 = vmatprep.subr.mxu1 %v7471_v45 }
 0x338   : > { %4945 = vmatprep.mubr.msk.f32.mxu0 %vm7392_vm1, %v7471_v45  ;;  %v2084_v21 = vadd.f32 %v2083_v17, %v1995_v20 }
 0x33a   : > { %4916 = vmatpush3.xpose.msra.mxu0 %v6073_v31  ;;  %4955 = vmatpush3.xpose.msk.msra.mxu1 %vm7503_vm2, %v7470_v6 }
 0x33b   : > { %4917 = vmatprep.subr.mxu0 %v7471_v45  ;;  %4956 = vmatprep.subr.mxu1 %v7471_v45 }
 0x33e   : > { %4918 = vmatpush3.xpose.msra.mxu0 %v6092_v47  ;;  %4957 = vmatpush3.xpose.msk.msra.mxu1 %vm5466_vm10, %v7470_v6 }
 0x33f   : > { %4919 = vmatprep.subr.mxu0 %v7471_v45  ;;  %4958 = vmatprep.subr.mxu1 %v7471_v45 }
 0x342   : > { %4920 = vmatpush3.xpose.msra.mxu0 %v6111_v59  ;;  %4959 = vmatpush3.xpose.msk.msra.mxu1 %vm7459_vm6, %v7470_v6 }
 0x343   : > { %4921 = vmatprep.subr.mxu0 %v7471_v45  ;;  %4960 = vmatprep.subr.mxu1 %v7471_v45 }
 0x346   : > { %4922 = vmatpush3.xpose.msra.mxu0 %v6134_v27  ;;  %4961 = vmatpush3.xpose.msk.msra.mxu1 %vm7502_vm8, %v7470_v6 }
 0x347   : > { %4923 = vmatprep.subr.mxu0 %v7471_v45  ;;  %4962 = vmatprep.subr.mxu1 %v7471_v45 }
 0x34a   : > { %4924 = vmatpush3.xpose.msra.mxu0 %v6151_v49  ;;  %4963 = vmatpush3.xpose.msk.msra.mxu1 %vm5541_vm0, %v7470_v6 }
 0x34b   : > { %4925 = vmatprep.subr.mxu0 %v7471_v45  ;;  %4964 = vmatprep.subr.mxu1 %v7471_v45 }
 0x34e   : > { %4926 = vmatpush3.xpose.msra.mxu0 %v6158_v52  ;;  %4965 = vmatpush3.xpose.msk.msra.mxu1 %vm7458_vm12, %v7470_v6  ;;  %v2295_v52 = vld [vmem:[#allocation3] sm:$0x1] }
 0x34f   : > { %4927 = vmatprep.subr.mxu0 %v7471_v45  ;;  %4966 = vmatprep.subr.mxu1 %v7471_v45 }
 0x352   : > { %4928 = vmatpush3.xpose.msra.mxu0 %v7475_v12  ;;  %4967 = vmatpush3.xpose.msk.msra.mxu1 %vm7496_vm14, %v7470_v6 }
 0x353   : > { %4929 = vmatprep.subr.mxu0 %v7471_v45  ;;  %4968 = vmatprep.subr.mxu1 %v7471_v45 }
 0x356   : > { %4930 = vmatpush3.xpose.msra.mxu0 %v7476_v63  ;;  %4969 = vmatpush3.xpose.msk.msra.mxu1 %vm5616_vm13, %v7470_v6 }
 0x357   : > { %4931 = vmatprep.subr.mxu0 %v7471_v45  ;;  %4970 = vmatprep.subr.mxu1 %v7471_v45 }
 0x35a   : > { %4932 = vmatpush3.xpose.msra.mxu0 %v7477_v44  ;;  %4971 = vmatpush3.xpose.msk.msra.mxu1 %vm5644_vm15, %v7470_v6 }
 0x35b   : > { %4933 = vmatprep.subr.mxu0 %v7471_v45  ;;  %4972 = vmatprep.subr.mxu1 %v7471_v45 }
 0x35e   : > { %4934 = vmatpush3.xpose.msra.mxu0 %v7478_v13  ;;  %4973 = vmatpush3.xpose.msk.msra.mxu1 %vm7479_vm11, %v7470_v6 }
 0x35f   : > { %4935 = vmatprep.subr.mxu0 %v7471_v45  ;;  %4974 = vmatprep.subr.mxu1 %v7471_v45 }
 0x362   : > { %4936 = vmatpush3.xpose.msra.mxu0 %v7480_v61  ;;  %4975 = vmatpush3.xpose.msk.msra.mxu1 %vm7439_vm9, %v7470_v6 }
 0x363   : > { %4937 = vmatprep.subr.mxu0 %v7471_v45  ;;  %4976 = vmatprep.subr.mxu1 %v7471_v45 }
 0x366   : > { %4938 = vmatpush3.xpose.msra.mxu0 %v7481_v22  ;;  %4977 = vmatpush3.xpose.msk.msra.mxu1 %vm7473_vm7, %v7470_v6 }
 0x367   : > { %4939 = vmatprep.subr.mxu0 %v7471_v45  ;;  %4978 = vmatprep.subr.mxu1 %v7471_v45 }
 0x36a   : > { %4940 = vmatpush3.xpose.msra.mxu0 %v7482_v51  ;;  %4979 = vmatpush3.xpose.msk.msra.mxu1 %vm7474_vm3, %v7470_v6 }
 0x36b   : > { %4941 = vmatprep.subr.mxu0 %v7471_v45 }
 0x36d   : > { %v2289_v24 = vpop.f32.mrf.mxu1  ;;  %4981 = vmatmul.mubr.f32.vlgmr.msra.gmra.mxu1 %v7470_v6 }
 0x36e   : > { %4942 = vmatpush3.xpose.msra.mxu0 %v7483_v15 }
 0x36f   : > { %v4772_v28 = vpop.f32.mrf.mxu1  ;;  %4943 = vmatprep.subr.mxu0 %v7471_v45 }
 0x372   : > { %4944 = vmatpush3.xpose.msra.mxu0 %v7485_v41 }
 0x375   : > { %v2202_v30 = vpop.f32.mrf.mxu0  ;;  %4946 = vmatmul.mubr.f32.vlgmr.msra.gmra.mxu0 %v7470_v6 }
 0x376   : > { %v2203_v34 = vadd.f32 %v2202_v30, %v2084_v21 }
 0x377   : > { %v4737_v48 = vpop.f32.mrf.mxu0 }
 0x378   : > { %v2290_v55 = vadd.f32 %v2289_v24, %v2203_v34 }
 0x37a   : > { %v2293_v62 = vadd.f32 %v2290_v55, %v1651_v40 }
 0x37c   : > { %2294 = vst [vmem:[#allocation2] sm:$0xff] %v2293_v62 }
 0x3ad   : > { %v2528_v26 = vpop.f32.mrf.mxu1 }
 0x3af   : > { %v4842_v46 = vpop.f32.mrf.mxu1 }
 0x3b5   : > { %v2378_v60 = vpop.f32.mrf.mxu0 }
 0x3b6   : > { %v2529_v33 = vadd.f32 %v2528_v26, %v2378_v60 }
 0x3b7   : > { %v4807_v19 = vpop.f32.mrf.mxu0 }
 0x3ed   : > { %v2716_v31 = vpop.f32.mrf.mxu1 }
 0x3ef   : > { %v4912_v0 = vpop.f32.mrf.mxu1 }
 0x3f5   : > { %v2630_v47 = vpop.f32.mrf.mxu0 }
 0x3f6   : > { %v2631_v50 = vadd.f32 %v2630_v47, %v2529_v33 }
 0x3f7   : > { %v4877_v59 = vpop.f32.mrf.mxu0 }
 0x3f8   : > { %v2717_v43 = vadd.f32 %v2716_v31, %v2631_v50 }
 0x42d   : > { %v2920_v38 = vpop.f32.mrf.mxu1 }
 0x42f   : > { %v4982_v27 = vpop.f32.mrf.mxu1 }
 0x435   : > { %v2834_v49 = vpop.f32.mrf.mxu0 }
 0x436   : > { %v2835_v42 = vadd.f32 %v2834_v49, %v2717_v43 }
 0x437   : > { %v4947_v35 = vpop.f32.mrf.mxu0 }
 0x438   : > { %v2921_v10 = vadd.f32 %v2920_v38, %v2835_v42  ;;  %2929 = sbr.rel (%p3718_p13) target bundleno = 1377 (0x561), region = 52 }
 0x43a   : > { %v2924_v16 = vadd.f32 %v2921_v10, %v2295_v52 }
 0x43c   : > { %2925 = vst [vmem:[#allocation3] sm:$0x1] %v2924_v16 }
 0x43d   : > { %v2941_v4 = vld [vmem:[#allocation7] sm:$0xff]  ;;  %v5216_v57 = vmov 0.0   ;;  %vm5217_vm0 = vmmov 0   ;;  %vm2948_vm4 = vcmask 64512   ;;  %v2942_v11 = vld [vmem:[%s7228_s3] sm:$0xff]  ;;  %v5218_v63 = vmov 0  }
 0x43e   : > { %4983 = vmatprep.subr.mxu0 %v5216_v57  ;;  %4985 = vmatprep.mubr.msk.f32.mxu0 %vm5217_vm0, %v5216_v57  ;;  %v2950_v29 = vsel %vm2948_vm4, %v2941_v4, 0  ;;  %v7504_v6 = vld [vmem:[#allocation13_spill] sm:$0xff] }
 0x43f   : > { %4988 = vmatprep.subr.mxu1 %v5216_v57  ;;  %4990 = vmatprep.mubr.msk.f32.mxu1 %vm5217_vm0, %v5216_v57  ;;  %v7505_v45 = vsub.s32 0, %v7504_v6  ;;  %v3018_v44 = vand.u32 4294901760, %v2950_v29  ;;  %v2932_v22 = vld [vmem:[#allocation2] sm:$0xff] }
 0x440   : > { %5081 = vset.pattern.permute.xlu0 %v5218_v63 }
 0x441   : > { %2945 = vperm.xlu0 %5081, %v2942_v11   ;;  %v3019_v13 = vsub.f32 %v2950_v29, %v3018_v44 }
 0x443   : > { %v2930_v37 = vld [vmem:[#allocation3] sm:$0x1]  ;;  %v3020_v61 = vand.u32 4294901760, %v3019_v13 }
 0x444   : > { %v2931_v36 = vmax.f32 %v2930_v37, 1.0 }
 0x445   : > { %v3021_v51 = vsub.f32 %v3019_v13, %v3020_v61 }
 0x446   : > { %v2937_v12 = vrot.slane %v2931_v36, %v7505_v45 }
 0x447   : > { %v3022_v5 = vand.u32 4294901760, %v3021_v51 }
 0x448   : > { %5082 = vrcp.f32 %v2937_v12 }
 0x455   : > { %v5083_v15 = vpop.eup %5082 }
 0x456   : > { %v2940_v41 = vmul.f32 %v5083_v15, %v2932_v22 }
 0x458   : > { %v2983_v14 = vand.u32 4294901760, %v2940_v41 }
 0x45a   : > { %4984 = vmatpush3.msra.mxu0 %v2983_v14  ;;  %v3060_v32 = vsub.f32 %v2940_v41, %v2983_v14 }
 0x45b   : > { %4986 = vmatmul.mubr.f32.vlgmr.msra.gmra.mxu0 %v3022_v5  ;;  %4993 = vmatprep.subr.mxu0 %v5216_v57 }
 0x45c   : > { %v3061_v9 = vand.u32 4294901760, %v3060_v32  ;;  %4994 = vmatpush3.msra.mxu0 %v3060_v32  ;;  %4995 = vmatprep.mubr.msk.f32.mxu0 %vm5217_vm0, %v5216_v57 }
 0x45d   : > { %5003 = vmatprep.subr.mxu0 %v5216_v57 }
 0x45e   : > { %v3062_v25 = vsub.f32 %v3060_v32, %v3061_v9 }
 0x45f   : > { %4996 = vmatmul.mubr.f32.vlgmr.msra.gmra.mxu0 %v3019_v13 }
 0x460   : > { %v3063_v23 = vand.u32 4294901760, %v3062_v25  ;;  %5004 = vmatpush3.msra.mxu0 %v3061_v9  ;;  %5005 = vmatprep.mubr.msk.f32.mxu0 %vm5217_vm0, %v5216_v57 }
 0x462   : > { %4989 = vmatpush3.msra.mxu1 %v3063_v23 }
 0x463   : > { %4991 = vmatmul.mubr.f32.vlgmr.msra.gmra.mxu1 %v3018_v44  ;;  %4998 = vmatprep.subr.mxu1 %v5216_v57 }
 0x464   : > { %4999 = vmatpush3.msra.mxu1 %v2983_v14  ;;  %5000 = vmatprep.mubr.msk.f32.mxu1 %vm5217_vm0, %v5216_v57 }
 0x465   : > { %5008 = vmatprep.subr.mxu1 %v5216_v57  ;;  %5006 = vmatmul.mubr.f32.vlgmr.msra.gmra.mxu0 %v3018_v44 }
 0x467   : > { %5001 = vmatmul.mubr.f32.vlgmr.msra.gmra.mxu1 %v3020_v61 }
 0x468   : > { %5009 = vmatpush3.msra.mxu1 %v2983_v14  ;;  %5010 = vmatprep.mubr.msk.f32.mxu1 %vm5217_vm0, %v5216_v57 }
 0x46b   : > { %5011 = vmatmul.mubr.f32.vlgmr.msra.gmra.mxu1 %v3018_v44 }
 0x4bc   : > { %v2946_v53 = vpop.permute.xlu0 %2945 }
 0x51b   : > { %v3024_v39 = vpop.f32.mrf.mxu0 }
 0x51c   : > { %v3025_v2 = vadd.f32 %v3024_v39, %v2946_v53 }
 0x51d   : > { %v4987_v7 = vpop.f32.mrf.mxu0 }
 0x51f   : > { %v3174_v8 = vpop.f32.mrf.mxu0 }
 0x521   : > { %v4997_v56 = vpop.f32.mrf.mxu0 }
 0x523   : > { %v3100_v1 = vpop.f32.mrf.mxu1 }
 0x524   : > { %v3101_v58 = vadd.f32 %v3100_v1, %v3025_v2 }
 0x525   : > { %v4992_v17 = vpop.f32.mrf.mxu1  ;;  %v3322_v18 = vpop.f32.mrf.mxu0 }
 0x526   : > { %v3175_v3 = vadd.f32 %v3174_v8, %v3101_v58 }
 0x527   : > { %v3248_v20 = vpop.f32.mrf.mxu1  ;;  %v5007_v54 = vpop.f32.mrf.mxu0 }
 0x528   : > { %v3249_v21 = vadd.f32 %v3248_v20, %v3175_v3 }
 0x529   : > { %v5002_v24 = vpop.f32.mrf.mxu1 }
 0x52a   : > { %v3323_v28 = vadd.f32 %v3322_v18, %v3249_v21 }
 0x52b   : > { %v3394_v30 = vpop.f32.mrf.mxu1 }
 0x52c   : > { %v3395_v34 = vadd.f32 %v3394_v30, %v3323_v28 }
 0x52d   : > { %v5012_v40 = vpop.f32.mrf.mxu1 }
 0x52e   : > { %v3398_v48 = vmul.f32 %v3395_v34, %v3395_v34 }
 0x530   : > { %v3399_v55 = vrot.slane %v3398_v48, 4 }
 0x532   : > { %v3400_v62 = vadd.f32 %v3399_v55, %v3398_v48 }
 0x534   : > { %v3401_v26 = vrot.slane %v3400_v62, 2 }
 0x536   : > { %v3402_v46 = vadd.f32 %v3401_v26, %v3400_v62 }
 0x538   : > { %v3403_v60 = vrot.slane %v3402_v46, 1 }
 0x53a   : > { %v3404_v33 = vadd.f32 %v3403_v60, %v3402_v46 }
 0x53c   : > { %5084 = vrsqrt.f32 %v3404_v33  ;;  %vm3407_vm6 = vcmp.eq.f32.partialorder %v3404_v33, inf  ;;  %v3410_v0 = vand.u32 2147483648, %v3404_v33  ;;  %vm3409_vm8 = vcmp.eq.f32.partialorder %v3404_v33, 0.0 }
 0x549   : > { %v5085_v19 = vpop.eup %5084 }
 0x54a   : > { %v3406_v31 = vmul.f32 %v5085_v19, %v3404_v33 }
 0x54c   : > { %v3408_v47 = vsel %vm3407_vm6, %v3404_v33, %v3406_v31 }
 0x54d   : > { %v3411_v50 = vsel %vm3409_vm8, %v3410_v0, %v3408_v47 }
 0x54e   : > { %v3412_v59 = vadd.f32 1e-08, %v3411_v50 }
 0x550   : > { %5086 = vrcp.f32 %v3412_v59 }
 0x55d   : > { %v5087_v43 = vpop.eup %5086 }
 0x55e   : > { %v3414_v38 = vmul.f32 %v5087_v43, %v3395_v34 }
 0x560   : > { %3415 = vst [vmem:[#allocation9] sm:$0xff] %v3414_v38 }
 0x561 PF: > { %p5034_p2 = scmp.eq.s32.totalorder %s5264_s19, 2  ;;  %s5219_s14 = smov [#allocation9]  }
 0x562   : > { %s3423_s15 = sshll.u32 %s5219_s14, 4  ;;  %s3424_s15 = int_to_ptr.vmem [resolvable:$true] %s3423_s15 }
 0x563   : > { %s5142_s18 = scalar_lea.vmem %s3424_s15, 128  ;;  %p5149_p12 = scmp.lt.s32.totalorder %s3424_s15, %s3424_s15 }
 0x564   : > { %p5143_p3 = scmp.ne.s32.totalorder %s3424_s15, %s5142_s18  ;;  %p5150_p4 = scmp.lt.s32.totalorder %s5142_s18, %s5142_s18 }
 0x566   : > { %p5144_p7 = pnand %p5143_p3, %p5034_p2  ;;  %p5151_p8 = por %p5150_p4, %p5149_p12 }
 0x568   : > { %p5145_p11 = pneg %p5144_p7 }
 0x56a   : > { %p5152_p10 = pnand %p5151_p8, %p5145_p11 }
 0x56c   : > { %5155 = shalt.err (!%p5152_p10)
}
 0x56d   : > { %5020 = dma.vmem_to_hbm [thread:$0]  (%p5034_p2), %s3424_s15, 128, %s7229_s4, [#allocation6]  }
 0x56e   : > { %5191 = dma.done.wait (%p5034_p2), [#allocation6], 128  }
 0x56f   : > { %5193 = vsyncadd (%p5034_p2), [#allocation6], 4294967168 }
 0x570 PF: > { %p16_p0 = scmp.ge.s32.totalorder %s5284_s24, 5   ;;  %s7506_s15 = smov %s5200_s16 }
 0x571   : > { %s7507_s16 = smov %s5204_s17  ;;  %s7508_s17 = smov %s5311_s6 }
 0x572   : > { %s7509_s18 = smov %s5284_s24  ;;  %18 = sbr.rel (!%p16_p0) target bundleno = 5 (0x5), region = 85 }
 0x577   :  { %3436 = vsyncpa [#allocation5], 1 }
 0x578   :  { %3438 = vsyncpa [#allocation5 + $0x1], 1 }
 0x579   :  { %3439 = vsyncpa [#allocation8], 1 }
 0x57a   :  { %3440 = vsyncpa [#allocation6], 1 }
 0x57b   :  { %3442 = vsyncpa [#allocation6 + $0x1], 1 }

</bundles_post_ra>
